<compile_context>
chip_gen: v7x
topology: tpu7x:2x2x1
jax: 0.10.0
libtpu: 0.0.40
codegen_flags: <defaults>
</compile_context>

<pallas_src>
import functools
import math

import jax
import jax.numpy as jnp
from jax.experimental import pallas as pl
from jax.experimental.pallas import tpu as pltpu


def _reprogramming_kernel(tgt_ref, kT_ref, v_ref,
                          wq_ref, bq_ref,
                          wo_ref, bo_ref,
                          out_ref,
                          o_scratch,
                          *, n_heads: int, d_keys: int):
    """One tile of flattened (B*L) rows per grid step.

    tgt_ref   : (TM, d_model)  bf16 rows of the flattened target embedding
    kT_ref    : (H, E, S)      bf16 precomputed keys   (grid-invariant)
    v_ref     : (H, S, E)      bf16 precomputed values (grid-invariant)
    wq        : (d_model, H*E) bf16   wo: (H*E, d_llm) bf16
    bq        : (1, H*E) f32          bo: (1, d_llm) f32
    out_ref   : (TM, d_llm)
    o_scratch : (TM, H*E) bf16 VMEM scratch (concatenated head outputs)
    """
    f32 = jnp.float32
    bf16 = jnp.bfloat16
    scale = 1.0 / math.sqrt(d_keys)

    # --- Q projection: bf16 operands, f32 accumulation ---
    q = jnp.dot(tgt_ref[...], wq_ref[...], preferred_element_type=f32) + bq_ref[...]
    q = q.astype(bf16)                              # MXU operand for score dots

    for h in range(n_heads):                        # static unroll, H small
        lo = h * d_keys
        qh = q[:, lo:lo + d_keys]                   # (TM, E) bf16
        kh = kT_ref[h]                              # (E, S)  bf16, leading-dim index
        vh = v_ref[h]                               # (S, E)  bf16, leading-dim index

        # scores: natural (M,K)x(K,N) matmul, no implicit RHS transpose
        s = jnp.dot(qh, kh, preferred_element_type=f32) * scale    # (TM, S) f32
        m = jnp.max(s, axis=-1, keepdims=True)
        p = jnp.exp(s - m)                          # f32 exp (EUP)
        denom = jnp.sum(p, axis=-1, keepdims=True)
        a = (p * pl.reciprocal(denom, approx=True)).astype(bf16)   # softmax row
        # (attention dropout is identity in eval mode)
        o_scratch[:, lo:lo + d_keys] = jnp.dot(
            a, vh, preferred_element_type=f32).astype(bf16)

    # --- output projection over concatenated heads: one deep MXU matmul ---
    out_ref[...] = (jnp.dot(o_scratch[...], wo_ref[...], preferred_element_type=f32)
                    + bo_ref[...]).astype(out_ref.dtype)


def reprogramming_layer(target, source, value, params, *, n_heads: int,
                        block_rows: int = 512):
    """Pallas implementation of ReprogrammingLayer.forward (eval mode)."""
    B, L, d_model = target.shape
    S, d_llm = source.shape
    wq, bq, wk, bk, wv, bv, wo, bo = params
    d_hidden = wq.shape[1]                           # H * E
    d_keys = d_hidden // n_heads
    H = n_heads
    f32, bf16 = jnp.float32, jnp.bfloat16

    # --- One-time K/V projections in the wrapper (plain XLA matmuls) ---
    k = (source @ wk + bk).reshape(S, H, d_keys)     # f32 compute
    v = (value @ wv + bv).reshape(S, H, d_keys)
    kT = jnp.transpose(k, (1, 2, 0)).astype(bf16)    # (H, E, S): sublane-friendly
    vH = jnp.transpose(v, (1, 0, 2)).astype(bf16)    # (H, S, E): leading-dim index

    # Flatten batch*patches into one row dimension; no wrapper-side pad —
    # the ragged last tile is masked by Pallas via the pl.cdiv grid.
    rows = B * L
    tgt2d = target.reshape(rows, d_model).astype(bf16)
    if rows >= 8:
        tm = max(8, (min(block_rows, rows) // 8) * 8)   # multiple of 8 (sublane)
    else:
        tm = rows                                       # full (tiny) row dim
    n_steps = pl.cdiv(rows, tm)

    wq_bf = wq.astype(bf16)
    wo_bf = wo.astype(bf16)
    args = (tgt2d, kT, vH, wq_bf, bq, wo_bf, bo)

    kernel = functools.partial(_reprogramming_kernel,
                               n_heads=n_heads, d_keys=d_keys)

    # Cost estimate (K/V projections are no longer done inside the kernel).
    flops = int(2 * rows * d_model * d_hidden          # Q projection
                + 2 * 2 * rows * S * d_hidden          # scores + A@V over heads
                + 2 * rows * d_hidden * d_llm)         # output projection
    transcendentals = int(rows * S * n_heads + rows * n_heads)
    out_itemsize = jnp.dtype(target.dtype).itemsize
    inv_bytes = int((kT.size + vH.size + wq.size + wo.size) * 2
                    + (bq.size + bo.size) * 4)
    bytes_accessed = int(tgt2d.size * 2 + rows * d_llm * out_itemsize + inv_bytes)

    # VMEM budget from actual buffer sizes (streamed tiles double-buffered,
    # invariants counted double-buffered as the worst case), plus headroom.
    est = (2 * tm * d_model * 2                        # target tile (bf16) x 2
           + 2 * tm * d_llm * out_itemsize             # output tile x 2
           + 2 * inv_bytes                             # grid-invariant operands
           + tm * d_hidden * 2)                        # o_scratch (bf16)
    vmem_limit = int(min(max(2 * est + 8 * (1 << 20), 32 * (1 << 20)),
                         96 * (1 << 20)))

    def build(single_buffer_invariants: bool):
        inv_kwargs = ({"pipeline_mode": pl.Buffered(1)}
                      if single_buffer_invariants else {})

        def inv(shape):
            return pl.BlockSpec(shape, lambda *_: (0,) * len(shape), **inv_kwargs)

        return pl.pallas_call(
            kernel,
            out_shape=jax.ShapeDtypeStruct((rows, d_llm), target.dtype),
            grid=(n_steps,),
            in_specs=[
                pl.BlockSpec((tm, d_model), lambda r: (r, 0)),  # streamed rows
                inv((H, d_keys, S)),                            # K^T (invariant)
                inv((H, S, d_keys)),                            # V   (invariant)
                inv(wq_bf.shape), inv(bq.shape),
                inv(wo_bf.shape), inv(bo.shape),
            ],
            out_specs=pl.BlockSpec((tm, d_llm), lambda r: (r, 0)),
            scratch_shapes=[pltpu.VMEM((tm, d_hidden), jnp.bfloat16)],
            compiler_params=pltpu.CompilerParams(
                dimension_semantics=("parallel",),
                vmem_limit_bytes=vmem_limit),
            cost_estimate=pl.CostEstimate(flops=flops,
                                          transcendentals=transcendentals,
                                          bytes_accessed=bytes_accessed),
        )

    try:
        # Single-buffer the grid-invariant operands (constant index maps):
        # default 2-deep pipelining only doubles their VMEM residency.
        out2d = jax.block_until_ready(build(True)(*args))
    except Exception:
        # Fallback for jax versions where pl.Buffered(1) is not accepted by
        # the Mosaic pipeliner; default double-buffering is still correct.
        out2d = build(False)(*args)

    return out2d.reshape(B, L, d_llm)


# ----------------------------- references ----------------------------------

def _reference_f32(target, source, value, params, *, n_heads: int):
    """Pure-JAX f32 reference matching the PyTorch forward (eval mode)."""
    wq, bq, wk, bk, wv, bv, wo, bo = params
    B, L, _ = target.shape
    S, _ = source.shape
    H = n_heads
    q = (target @ wq + bq).reshape(B, L, H, -1)
    k = (source @ wk + bk).reshape(S, H, -1)
    v = (value @ wv + bv).reshape(S, H, -1)
    E = q.shape[-1]
    scores = jnp.einsum('blhe,she->bhls', q, k)
    A = jax.nn.softmax(scores / math.sqrt(E), axis=-1)
    out = jnp.einsum('bhls,she->blhe', A, v).reshape(B, L, -1)
    return out @ wo + bo


def _reference_bf16(target, source, value, params, *, n_heads: int):
    """Reference mirroring the kernel's bf16 operand precision (f32 accum)."""
    wq, bq, wk, bk, wv, bv, wo, bo = params
    B, L, d_model = target.shape
    S, _ = source.shape
    H = n_heads
    E = wq.shape[1] // H
    bf = lambda x: x.astype(jnp.bfloat16).astype(jnp.float32)  # bf16 rounding

    t = bf(target.reshape(B * L, d_model))
    q = bf(t @ bf(wq) + bq).reshape(B * L, H, E)
    k = bf(source @ wk + bk).reshape(S, H, E)
    v = bf(value @ wv + bv).reshape(S, H, E)
    s = jnp.einsum('rhe,she->hrs', q, k) / math.sqrt(E)
    A = bf(jax.nn.softmax(s, axis=-1))
    o = bf(jnp.einsum('hrs,she->rhe', A, v)).reshape(B * L, H * E)
    out = (o @ bf(wo) + bo).astype(target.dtype)
    return out.reshape(B, L, -1)


def _linear_init(key, fan_in, fan_out):
    """Deterministic init mimicking torch.nn.Linear (uniform +-1/sqrt(fan_in)).
    Weight returned as [in, out]."""
    kw, kb = jax.random.split(key)
    bound = 1.0 / math.sqrt(fan_in)
    w = jax.random.uniform(kw, (fan_in, fan_out), jnp.float32, -bound, bound)
    b = jax.random.uniform(kb, (1, fan_out), jnp.float32, -bound, bound)
    return w, b


if __name__ == "__main__":
    # Small shapes consistent with the module (d_keys plays the role of d_ff).
    B, L = 2, 8           # batch, num patches
    d_model = 32          # patch embedding dim
    n_heads = 4
    d_keys = 16           # per-head dim (ReprogrammingLayer gets d_ff here)
    d_llm = 128           # LLM hidden dim (lane-dense toy value)
    S = 16                # number of text prototypes

    key = jax.random.PRNGKey(0)
    k_t, k_s, k_v, k_q, k_k, k_vp, k_o = jax.random.split(key, 7)

    target = jax.random.normal(k_t, (B, L, d_model), jnp.float32)
    source = jax.random.normal(k_s, (S, d_llm), jnp.float32)
    value = jax.random.normal(k_v, (S, d_llm), jnp.float32)

    wq, bq = _linear_init(k_q, d_model, d_keys * n_heads)
    wk, bk = _linear_init(k_k, d_llm, d_keys * n_heads)
    wv, bv = _linear_init(k_vp, d_llm, d_keys * n_heads)
    wo, bo = _linear_init(k_o, d_keys * n_heads, d_llm)
    params = (wq, bq, wk, bk, wv, bv, wo, bo)

    out = reprogramming_layer(target, source, value, params, n_heads=n_heads)
    out = jax.block_until_ready(out)
    assert out.shape == (B, L, d_llm), out.shape
    assert bool(jnp.all(jnp.isfinite(out)))

    # Tight check against a reference with matching bf16 operand precision
    # (isolates kernel bugs from expected bf16 quantization / approx recip).
    ref_bf16 = _reference_bf16(target, source, value, params, n_heads=n_heads)
    assert jnp.allclose(out, ref_bf16, atol=5e-3, rtol=5e-3), \
        float(jnp.max(jnp.abs(out - ref_bf16)))

    # Loose sanity check against the full-f32 PyTorch-semantics reference
    # (difference is bf16 operand quantization on the MXU path).
    ref_f32 = _reference_f32(target, source, value, params, n_heads=n_heads)
    assert jnp.allclose(out, ref_f32, atol=1e-1, rtol=1e-1), \
        float(jnp.max(jnp.abs(out - ref_f32)))

    print("KERNEL_OK")
</pallas_src>

<mosaic_0001>
module attributes {stable_mosaic.version = 11 : i64} {
  func.func @_reprogramming_kernel(%arg0: i32, %arg1: memref<16x32xbf16, #tpu.memory_space<vmem>>, %arg2: memref<4x16x16xbf16, #tpu.memory_space<vmem>>, %arg3: memref<4x16x16xbf16, #tpu.memory_space<vmem>>, %arg4: memref<32x64xbf16, #tpu.memory_space<vmem>>, %arg5: memref<1x64xf32, #tpu.memory_space<vmem>>, %arg6: memref<64x128xbf16, #tpu.memory_space<vmem>>, %arg7: memref<1x128xf32, #tpu.memory_space<vmem>>, %arg8: memref<16x128xf32, #tpu.memory_space<vmem>>, %arg9: memref<16x64xbf16, #tpu.memory_space<vmem>>) attributes {dimension_semantics = [#tpu.dimension_semantics<parallel>], iteration_bounds = array<i64: 1>, scalar_prefetch = 0 : i64, scratch_operands = 1 : i64, tpu.core_type = #tpu.core_type<tc>, window_params = [{transform_indices = @transform_0, window_bounds = array<i64: 16, 32>}, {pipeline_mode = #tpu.pipeline_mode<synchronous>, transform_indices = @transform_1, window_bounds = array<i64: 4, 16, 16>}, {pipeline_mode = #tpu.pipeline_mode<synchronous>, transform_indices = @transform_2, window_bounds = array<i64: 4, 16, 16>}, {pipeline_mode = #tpu.pipeline_mode<synchronous>, transform_indices = @transform_3, window_bounds = array<i64: 32, 64>}, {pipeline_mode = #tpu.pipeline_mode<synchronous>, transform_indices = @transform_4, window_bounds = array<i64: 1, 64>}, {pipeline_mode = #tpu.pipeline_mode<synchronous>, transform_indices = @transform_5, window_bounds = array<i64: 64, 128>}, {pipeline_mode = #tpu.pipeline_mode<synchronous>, transform_indices = @transform_6, window_bounds = array<i64: 1, 128>}, {transform_indices = @transform_7, window_bounds = array<i64: 16, 128>}]} {
    %c0 = arith.constant 0 : index
    %c0_0 = arith.constant 0 : index
    %0 = vector.load %arg1[%c0, %c0_0] : memref<16x32xbf16, #tpu.memory_space<vmem>>, vector<16x32xbf16>
    %c0_1 = arith.constant 0 : index
    %c0_2 = arith.constant 0 : index
    %1 = vector.load %arg4[%c0_1, %c0_2] : memref<32x64xbf16, #tpu.memory_space<vmem>>, vector<32x64xbf16>
    %cst = arith.constant dense<0.000000e+00> : vector<16x64xf32>
    %2 = tpu.matmul %0, %1, %cst {dimension_numbers = #tpu.dot_dimension_numbers<[1], [0], [0], [1], [0, 0, 1, 1], [], []>} : vector<16x32xbf16>, vector<32x64xbf16>, vector<16x64xf32> -> vector<16x64xf32>
    %c0_3 = arith.constant 0 : index
    %c0_4 = arith.constant 0 : index
    %3 = vector.load %arg5[%c0_3, %c0_4] : memref<1x64xf32, #tpu.memory_space<vmem>>, vector<1x64xf32>
    %4 = vector.broadcast %3 : vector<1x64xf32> to vector<16x64xf32>
    %5 = arith.addf %2, %4 : vector<16x64xf32>
    %6 = arith.truncf %5 : vector<16x64xf32> to vector<16x64xbf16>
    %7 = vector.extract_strided_slice %6 {offsets = [0, 0], sizes = [16, 16], strides = [1, 1]} : vector<16x64xbf16> to vector<16x16xbf16>
    %c0_5 = arith.constant 0 : index
    %c0_6 = arith.constant 0 : index
    %c0_7 = arith.constant 0 : index
    %8 = vector.load %arg2[%c0_5, %c0_6, %c0_7] : memref<4x16x16xbf16, #tpu.memory_space<vmem>>, vector<1x16x16xbf16>
    %9 = vector.shape_cast %8 : vector<1x16x16xbf16> to vector<16x16xbf16>
    %c0_8 = arith.constant 0 : index
    %c0_9 = arith.constant 0 : index
    %c0_10 = arith.constant 0 : index
    %10 = vector.load %arg3[%c0_8, %c0_9, %c0_10] : memref<4x16x16xbf16, #tpu.memory_space<vmem>>, vector<1x16x16xbf16>
    %11 = vector.shape_cast %10 : vector<1x16x16xbf16> to vector<16x16xbf16>
    %cst_11 = arith.constant dense<0.000000e+00> : vector<16x16xf32>
    %12 = tpu.matmul %7, %9, %cst_11 {dimension_numbers = #tpu.dot_dimension_numbers<[1], [0], [0], [1], [0, 0, 1, 1], [], []>} : vector<16x16xbf16>, vector<16x16xbf16>, vector<16x16xf32> -> vector<16x16xf32>
    %cst_12 = arith.constant 2.500000e-01 : f32
    %13 = vector.broadcast %cst_12 : f32 to vector<16x16xf32>
    %14 = arith.mulf %12, %13 : vector<16x16xf32>
    %cst_13 = arith.constant dense<0xFF800000> : vector<16xf32>
    %15 = vector.multi_reduction <maximumf>, %14, %cst_13 [1] : vector<16x16xf32> to vector<16xf32>
    %16 = vector.shape_cast %15 : vector<16xf32> to vector<16x1xf32>
    %17 = vector.broadcast %16 : vector<16x1xf32> to vector<16x16xf32>
    %18 = arith.subf %14, %17 : vector<16x16xf32>
    %19 = math.exp %18 : vector<16x16xf32>
    %cst_14 = arith.constant dense<0.000000e+00> : vector<16xf32>
    %20 = vector.multi_reduction <add>, %19, %cst_14 [1] : vector<16x16xf32> to vector<16xf32>
    %21 = vector.shape_cast %20 : vector<16xf32> to vector<16x1xf32>
    %22 = tpu.reciprocal %21 {approx = true} : vector<16x1xf32> -> vector<16x1xf32>
    %23 = vector.broadcast %22 : vector<16x1xf32> to vector<16x16xf32>
    %24 = arith.mulf %19, %23 : vector<16x16xf32>
    %25 = arith.truncf %24 : vector<16x16xf32> to vector<16x16xbf16>
    %cst_15 = arith.constant dense<0.000000e+00> : vector<16x16xf32>
    %26 = tpu.matmul %25, %11, %cst_15 {dimension_numbers = #tpu.dot_dimension_numbers<[1], [0], [0], [1], [0, 0, 1, 1], [], []>} : vector<16x16xbf16>, vector<16x16xbf16>, vector<16x16xf32> -> vector<16x16xf32>
    %27 = arith.truncf %26 : vector<16x16xf32> to vector<16x16xbf16>
    %c0_16 = arith.constant 0 : index
    %c0_17 = arith.constant 0 : index
    %28 = vector.load %arg9[%c0_16, %c0_17] : memref<16x64xbf16, #tpu.memory_space<vmem>>, vector<16x16xbf16>
    tpu.vector_store %arg9[%c0_16, %c0_17], %27 {strides = array<i32>} : memref<16x64xbf16, #tpu.memory_space<vmem>>, vector<16x16xbf16>,
    %29 = vector.extract_strided_slice %6 {offsets = [0, 16], sizes = [16, 16], strides = [1, 1]} : vector<16x64xbf16> to vector<16x16xbf16>
    %c1 = arith.constant 1 : index
    %c0_18 = arith.constant 0 : index
    %c0_19 = arith.constant 0 : index
    %30 = vector.load %arg2[%c1, %c0_18, %c0_19] : memref<4x16x16xbf16, #tpu.memory_space<vmem>>, vector<1x16x16xbf16>
    %31 = vector.shape_cast %30 : vector<1x16x16xbf16> to vector<16x16xbf16>
    %c1_20 = arith.constant 1 : index
    %c0_21 = arith.constant 0 : index
    %c0_22 = arith.constant 0 : index
    %32 = vector.load %arg3[%c1_20, %c0_21, %c0_22] : memref<4x16x16xbf16, #tpu.memory_space<vmem>>, vector<1x16x16xbf16>
    %33 = vector.shape_cast %32 : vector<1x16x16xbf16> to vector<16x16xbf16>
    %cst_23 = arith.constant dense<0.000000e+00> : vector<16x16xf32>
    %34 = tpu.matmul %29, %31, %cst_23 {dimension_numbers = #tpu.dot_dimension_numbers<[1], [0], [0], [1], [0, 0, 1, 1], [], []>} : vector<16x16xbf16>, vector<16x16xbf16>, vector<16x16xf32> -> vector<16x16xf32>
    %cst_24 = arith.constant 2.500000e-01 : f32
    %35 = vector.broadcast %cst_24 : f32 to vector<16x16xf32>
    %36 = arith.mulf %34, %35 : vector<16x16xf32>
    %cst_25 = arith.constant dense<0xFF800000> : vector<16xf32>
    %37 = vector.multi_reduction <maximumf>, %36, %cst_25 [1] : vector<16x16xf32> to vector<16xf32>
    %38 = vector.shape_cast %37 : vector<16xf32> to vector<16x1xf32>
    %39 = vector.broadcast %38 : vector<16x1xf32> to vector<16x16xf32>
    %40 = arith.subf %36, %39 : vector<16x16xf32>
    %41 = math.exp %40 : vector<16x16xf32>
    %cst_26 = arith.constant dense<0.000000e+00> : vector<16xf32>
    %42 = vector.multi_reduction <add>, %41, %cst_26 [1] : vector<16x16xf32> to vector<16xf32>
    %43 = vector.shape_cast %42 : vector<16xf32> to vector<16x1xf32>
    %44 = tpu.reciprocal %43 {approx = true} : vector<16x1xf32> -> vector<16x1xf32>
    %45 = vector.broadcast %44 : vector<16x1xf32> to vector<16x16xf32>
    %46 = arith.mulf %41, %45 : vector<16x16xf32>
    %47 = arith.truncf %46 : vector<16x16xf32> to vector<16x16xbf16>
    %cst_27 = arith.constant dense<0.000000e+00> : vector<16x16xf32>
    %48 = tpu.matmul %47, %33, %cst_27 {dimension_numbers = #tpu.dot_dimension_numbers<[1], [0], [0], [1], [0, 0, 1, 1], [], []>} : vector<16x16xbf16>, vector<16x16xbf16>, vector<16x16xf32> -> vector<16x16xf32>
    %49 = arith.truncf %48 : vector<16x16xf32> to vector<16x16xbf16>
    %c0_28 = arith.constant 0 : index
    %c16 = arith.constant 16 : index
    %50 = vector.load %arg9[%c0_28, %c16] : memref<16x64xbf16, #tpu.memory_space<vmem>>, vector<16x16xbf16>
    tpu.vector_store %arg9[%c0_28, %c16], %49 {strides = array<i32>} : memref<16x64xbf16, #tpu.memory_space<vmem>>, vector<16x16xbf16>,
    %51 = vector.extract_strided_slice %6 {offsets = [0, 32], sizes = [16, 16], strides = [1, 1]} : vector<16x64xbf16> to vector<16x16xbf16>
    %c2 = arith.constant 2 : index
    %c0_29 = arith.constant 0 : index
    %c0_30 = arith.constant 0 : index
    %52 = vector.load %arg2[%c2, %c0_29, %c0_30] : memref<4x16x16xbf16, #tpu.memory_space<vmem>>, vector<1x16x16xbf16>
    %53 = vector.shape_cast %52 : vector<1x16x16xbf16> to vector<16x16xbf16>
    %c2_31 = arith.constant 2 : index
    %c0_32 = arith.constant 0 : index
    %c0_33 = arith.constant 0 : index
    %54 = vector.load %arg3[%c2_31, %c0_32, %c0_33] : memref<4x16x16xbf16, #tpu.memory_space<vmem>>, vector<1x16x16xbf16>
    %55 = vector.shape_cast %54 : vector<1x16x16xbf16> to vector<16x16xbf16>
    %cst_34 = arith.constant dense<0.000000e+00> : vector<16x16xf32>
    %56 = tpu.matmul %51, %53, %cst_34 {dimension_numbers = #tpu.dot_dimension_numbers<[1], [0], [0], [1], [0, 0, 1, 1], [], []>} : vector<16x16xbf16>, vector<16x16xbf16>, vector<16x16xf32> -> vector<16x16xf32>
    %cst_35 = arith.constant 2.500000e-01 : f32
    %57 = vector.broadcast %cst_35 : f32 to vector<16x16xf32>
    %58 = arith.mulf %56, %57 : vector<16x16xf32>
    %cst_36 = arith.constant dense<0xFF800000> : vector<16xf32>
    %59 = vector.multi_reduction <maximumf>, %58, %cst_36 [1] : vector<16x16xf32> to vector<16xf32>
    %60 = vector.shape_cast %59 : vector<16xf32> to vector<16x1xf32>
    %61 = vector.broadcast %60 : vector<16x1xf32> to vector<16x16xf32>
    %62 = arith.subf %58, %61 : vector<16x16xf32>
    %63 = math.exp %62 : vector<16x16xf32>
    %cst_37 = arith.constant dense<0.000000e+00> : vector<16xf32>
    %64 = vector.multi_reduction <add>, %63, %cst_37 [1] : vector<16x16xf32> to vector<16xf32>
    %65 = vector.shape_cast %64 : vector<16xf32> to vector<16x1xf32>
    %66 = tpu.reciprocal %65 {approx = true} : vector<16x1xf32> -> vector<16x1xf32>
    %67 = vector.broadcast %66 : vector<16x1xf32> to vector<16x16xf32>
    %68 = arith.mulf %63, %67 : vector<16x16xf32>
    %69 = arith.truncf %68 : vector<16x16xf32> to vector<16x16xbf16>
    %cst_38 = arith.constant dense<0.000000e+00> : vector<16x16xf32>
    %70 = tpu.matmul %69, %55, %cst_38 {dimension_numbers = #tpu.dot_dimension_numbers<[1], [0], [0], [1], [0, 0, 1, 1], [], []>} : vector<16x16xbf16>, vector<16x16xbf16>, vector<16x16xf32> -> vector<16x16xf32>
    %71 = arith.truncf %70 : vector<16x16xf32> to vector<16x16xbf16>
    %c0_39 = arith.constant 0 : index
    %c32 = arith.constant 32 : index
    %72 = vector.load %arg9[%c0_39, %c32] : memref<16x64xbf16, #tpu.memory_space<vmem>>, vector<16x16xbf16>
    tpu.vector_store %arg9[%c0_39, %c32], %71 {strides = array<i32>} : memref<16x64xbf16, #tpu.memory_space<vmem>>, vector<16x16xbf16>,
    %73 = vector.extract_strided_slice %6 {offsets = [0, 48], sizes = [16, 16], strides = [1, 1]} : vector<16x64xbf16> to vector<16x16xbf16>
    %c3 = arith.constant 3 : index
    %c0_40 = arith.constant 0 : index
    %c0_41 = arith.constant 0 : index
    %74 = vector.load %arg2[%c3, %c0_40, %c0_41] : memref<4x16x16xbf16, #tpu.memory_space<vmem>>, vector<1x16x16xbf16>
    %75 = vector.shape_cast %74 : vector<1x16x16xbf16> to vector<16x16xbf16>
    %c3_42 = arith.constant 3 : index
    %c0_43 = arith.constant 0 : index
    %c0_44 = arith.constant 0 : index
    %76 = vector.load %arg3[%c3_42, %c0_43, %c0_44] : memref<4x16x16xbf16, #tpu.memory_space<vmem>>, vector<1x16x16xbf16>
    %77 = vector.shape_cast %76 : vector<1x16x16xbf16> to vector<16x16xbf16>
    %cst_45 = arith.constant dense<0.000000e+00> : vector<16x16xf32>
    %78 = tpu.matmul %73, %75, %cst_45 {dimension_numbers = #tpu.dot_dimension_numbers<[1], [0], [0], [1], [0, 0, 1, 1], [], []>} : vector<16x16xbf16>, vector<16x16xbf16>, vector<16x16xf32> -> vector<16x16xf32>
    %cst_46 = arith.constant 2.500000e-01 : f32
    %79 = vector.broadcast %cst_46 : f32 to vector<16x16xf32>
    %80 = arith.mulf %78, %79 : vector<16x16xf32>
    %cst_47 = arith.constant dense<0xFF800000> : vector<16xf32>
    %81 = vector.multi_reduction <maximumf>, %80, %cst_47 [1] : vector<16x16xf32> to vector<16xf32>
    %82 = vector.shape_cast %81 : vector<16xf32> to vector<16x1xf32>
    %83 = vector.broadcast %82 : vector<16x1xf32> to vector<16x16xf32>
    %84 = arith.subf %80, %83 : vector<16x16xf32>
    %85 = math.exp %84 : vector<16x16xf32>
    %cst_48 = arith.constant dense<0.000000e+00> : vector<16xf32>
    %86 = vector.multi_reduction <add>, %85, %cst_48 [1] : vector<16x16xf32> to vector<16xf32>
    %87 = vector.shape_cast %86 : vector<16xf32> to vector<16x1xf32>
    %88 = tpu.reciprocal %87 {approx = true} : vector<16x1xf32> -> vector<16x1xf32>
    %89 = vector.broadcast %88 : vector<16x1xf32> to vector<16x16xf32>
    %90 = arith.mulf %85, %89 : vector<16x16xf32>
    %91 = arith.truncf %90 : vector<16x16xf32> to vector<16x16xbf16>
    %cst_49 = arith.constant dense<0.000000e+00> : vector<16x16xf32>
    %92 = tpu.matmul %91, %77, %cst_49 {dimension_numbers = #tpu.dot_dimension_numbers<[1], [0], [0], [1], [0, 0, 1, 1], [], []>} : vector<16x16xbf16>, vector<16x16xbf16>, vector<16x16xf32> -> vector<16x16xf32>
    %93 = arith.truncf %92 : vector<16x16xf32> to vector<16x16xbf16>
    %c0_50 = arith.constant 0 : index
    %c48 = arith.constant 48 : index
    %94 = vector.load %arg9[%c0_50, %c48] : memref<16x64xbf16, #tpu.memory_space<vmem>>, vector<16x16xbf16>
    tpu.vector_store %arg9[%c0_50, %c48], %93 {strides = array<i32>} : memref<16x64xbf16, #tpu.memory_space<vmem>>, vector<16x16xbf16>,
    %c0_51 = arith.constant 0 : index
    %c0_52 = arith.constant 0 : index
    %95 = vector.load %arg9[%c0_51, %c0_52] : memref<16x64xbf16, #tpu.memory_space<vmem>>, vector<16x64xbf16>
    %c0_53 = arith.constant 0 : index
    %c0_54 = arith.constant 0 : index
    %96 = vector.load %arg6[%c0_53, %c0_54] : memref<64x128xbf16, #tpu.memory_space<vmem>>, vector<64x128xbf16>
    %cst_55 = arith.constant dense<0.000000e+00> : vector<16x128xf32>
    %97 = tpu.matmul %95, %96, %cst_55 {dimension_numbers = #tpu.dot_dimension_numbers<[1], [0], [0], [1], [0, 0, 1, 1], [], []>} : vector<16x64xbf16>, vector<64x128xbf16>, vector<16x128xf32> -> vector<16x128xf32>
    %c0_56 = arith.constant 0 : index
    %c0_57 = arith.constant 0 : index
    %98 = vector.load %arg7[%c0_56, %c0_57] : memref<1x128xf32, #tpu.memory_space<vmem>>, vector<1x128xf32>
    %99 = vector.broadcast %98 : vector<1x128xf32> to vector<16x128xf32>
    %100 = arith.addf %97, %99 : vector<16x128xf32>
    %c0_58 = arith.constant 0 : index
    %c0_59 = arith.constant 0 : index
    %101 = vector.load %arg8[%c0_58, %c0_59] : memref<16x128xf32, #tpu.memory_space<vmem>>, vector<16x128xf32>
    tpu.vector_store %arg8[%c0_58, %c0_59], %100 {strides = array<i32>} : memref<16x128xf32, #tpu.memory_space<vmem>>, vector<16x128xf32>,
    return
  }
  func.func @transform_0(%arg0: i32) -> (i32, i32) {
    %c0_i32 = arith.constant 0 : i32
    %c0_i32_0 = arith.constant 0 : i32
    return %arg0, %c0_i32 : i32, i32
  }
  func.func @transform_1(%arg0: i32) -> (i32, i32, i32) {
    %c0_i32 = arith.constant 0 : i32
    %c0_i32_0 = arith.constant 0 : i32
    %c0_i32_1 = arith.constant 0 : i32
    %c0_i32_2 = arith.constant 0 : i32
    return %c0_i32, %c0_i32_0, %c0_i32_1 : i32, i32, i32
  }
  func.func @transform_2(%arg0: i32) -> (i32, i32, i32) {
    %c0_i32 = arith.constant 0 : i32
    %c0_i32_0 = arith.constant 0 : i32
    %c0_i32_1 = arith.constant 0 : i32
    %c0_i32_2 = arith.constant 0 : i32
    return %c0_i32, %c0_i32_0, %c0_i32_1 : i32, i32, i32
  }
  func.func @transform_3(%arg0: i32) -> (i32, i32) {
    %c0_i32 = arith.constant 0 : i32
    %c0_i32_0 = arith.constant 0 : i32
    %c0_i32_1 = arith.constant 0 : i32
    return %c0_i32, %c0_i32_0 : i32, i32
  }
  func.func @transform_4(%arg0: i32) -> (i32, i32) {
    %c0_i32 = arith.constant 0 : i32
    %c0_i32_0 = arith.constant 0 : i32
    %c0_i32_1 = arith.constant 0 : i32
    return %c0_i32, %c0_i32_0 : i32, i32
  }
  func.func @transform_5(%arg0: i32) -> (i32, i32) {
    %c0_i32 = arith.constant 0 : i32
    %c0_i32_0 = arith.constant 0 : i32
    %c0_i32_1 = arith.constant 0 : i32
    return %c0_i32, %c0_i32_0 : i32, i32
  }
  func.func @transform_6(%arg0: i32) -> (i32, i32) {
    %c0_i32 = arith.constant 0 : i32
    %c0_i32_0 = arith.constant 0 : i32
    %c0_i32_1 = arith.constant 0 : i32
    return %c0_i32, %c0_i32_0 : i32, i32
  }
  func.func @transform_7(%arg0: i32) -> (i32, i32) {
    %c0_i32 = arith.constant 0 : i32
    %c0_i32_0 = arith.constant 0 : i32
    return %arg0, %c0_i32 : i32, i32
  }
}

module attributes {stable_mosaic.version = 11 : i64} {
  func.func @_reprogramming_kernel(%arg0: i32, %arg1: memref<16x32xbf16, #tpu.memory_space<vmem>>, %arg2: memref<4x16x16xbf16, #tpu.memory_space<vmem>>, %arg3: memref<4x16x16xbf16, #tpu.memory_space<vmem>>, %arg4: memref<32x64xbf16, #tpu.memory_space<vmem>>, %arg5: memref<1x64xf32, #tpu.memory_space<vmem>>, %arg6: memref<64x128xbf16, #tpu.memory_space<vmem>>, %arg7: memref<1x128xf32, #tpu.memory_space<vmem>>, %arg8: memref<16x128xf32, #tpu.memory_space<vmem>>, %arg9: memref<16x64xbf16, #tpu.memory_space<vmem>>) attributes {dimension_semantics = [#tpu.dimension_semantics<parallel>], iteration_bounds = array<i64: 1>, scalar_prefetch = 0 : i64, scratch_operands = 1 : i64, tpu.core_type = #tpu.core_type<tc>, window_params = [{transform_indices = @transform_0, window_bounds = array<i64: 16, 32>}, {pipeline_mode = #tpu.pipeline_mode<synchronous>, transform_indices = @transform_1, window_bounds = array<i64: 4, 16, 16>}, {pipeline_mode = #tpu.pipeline_mode<synchronous>, transform_indices = @transform_2, window_bounds = array<i64: 4, 16, 16>}, {pipeline_mode = #tpu.pipeline_mode<synchronous>, transform_indices = @transform_3, window_bounds = array<i64: 32, 64>}, {pipeline_mode = #tpu.pipeline_mode<synchronous>, transform_indices = @transform_4, window_bounds = array<i64: 1, 64>}, {pipeline_mode = #tpu.pipeline_mode<synchronous>, transform_indices = @transform_5, window_bounds = array<i64: 64, 128>}, {pipeline_mode = #tpu.pipeline_mode<synchronous>, transform_indices = @transform_6, window_bounds = array<i64: 1, 128>}, {transform_indices = @transform_7, window_bounds = array<i64: 16, 128>}]} {
    %c0 = arith.constant 0 : index
    %c0_0 = arith.constant 0 : index
    %0 = vector.load %arg1[%c0, %c0_0] : memref<16x32xbf16, #tpu.memory_space<vmem>>, vector<16x32xbf16>
    %c0_1 = arith.constant 0 : index
    %c0_2 = arith.constant 0 : index
    %1 = vector.load %arg4[%c0_1, %c0_2] : memref<32x64xbf16, #tpu.memory_space<vmem>>, vector<32x64xbf16>
    %cst = arith.constant dense<0.000000e+00> : vector<16x64xf32>
    %2 = tpu.matmul %0, %1, %cst {dimension_numbers = #tpu.dot_dimension_numbers<[1], [0], [0], [1], [0, 0, 1, 1], [], []>} : vector<16x32xbf16>, vector<32x64xbf16>, vector<16x64xf32> -> vector<16x64xf32>
    %c0_3 = arith.constant 0 : index
    %c0_4 = arith.constant 0 : index
    %3 = vector.load %arg5[%c0_3, %c0_4] : memref<1x64xf32, #tpu.memory_space<vmem>>, vector<1x64xf32>
    %4 = vector.broadcast %3 : vector<1x64xf32> to vector<16x64xf32>
    %5 = arith.addf %2, %4 : vector<16x64xf32>
    %6 = arith.truncf %5 : vector<16x64xf32> to vector<16x64xbf16>
    %7 = vector.extract_strided_slice %6 {offsets = [0, 0], sizes = [16, 16], strides = [1, 1]} : vector<16x64xbf16> to vector<16x16xbf16>
    %c0_5 = arith.constant 0 : index
    %c0_6 = arith.constant 0 : index
    %c0_7 = arith.constant 0 : index
    %8 = vector.load %arg2[%c0_5, %c0_6, %c0_7] : memref<4x16x16xbf16, #tpu.memory_space<vmem>>, vector<1x16x16xbf16>
    %9 = vector.shape_cast %8 : vector<1x16x16xbf16> to vector<16x16xbf16>
    %c0_8 = arith.constant 0 : index
    %c0_9 = arith.constant 0 : index
    %c0_10 = arith.constant 0 : index
    %10 = vector.load %arg3[%c0_8, %c0_9, %c0_10] : memref<4x16x16xbf16, #tpu.memory_space<vmem>>, vector<1x16x16xbf16>
    %11 = vector.shape_cast %10 : vector<1x16x16xbf16> to vector<16x16xbf16>
    %cst_11 = arith.constant dense<0.000000e+00> : vector<16x16xf32>
    %12 = tpu.matmul %7, %9, %cst_11 {dimension_numbers = #tpu.dot_dimension_numbers<[1], [0], [0], [1], [0, 0, 1, 1], [], []>} : vector<16x16xbf16>, vector<16x16xbf16>, vector<16x16xf32> -> vector<16x16xf32>
    %cst_12 = arith.constant 2.500000e-01 : f32
    %13 = vector.broadcast %cst_12 : f32 to vector<16x16xf32>
    %14 = arith.mulf %12, %13 : vector<16x16xf32>
    %cst_13 = arith.constant dense<0xFF800000> : vector<16xf32>
    %15 = vector.multi_reduction <maximumf>, %14, %cst_13 [1] : vector<16x16xf32> to vector<16xf32>
    %16 = vector.shape_cast %15 : vector<16xf32> to vector<16x1xf32>
    %17 = vector.broadcast %16 : vector<16x1xf32> to vector<16x16xf32>
    %18 = arith.subf %14, %17 : vector<16x16xf32>
    %19 = math.exp %18 : vector<16x16xf32>
    %cst_14 = arith.constant dense<0.000000e+00> : vector<16xf32>
    %20 = vector.multi_reduction <add>, %19, %cst_14 [1] : vector<16x16xf32> to vector<16xf32>
    %21 = vector.shape_cast %20 : vector<16xf32> to vector<16x1xf32>
    %22 = tpu.reciprocal %21 {approx = true} : vector<16x1xf32> -> vector<16x1xf32>
    %23 = vector.broadcast %22 : vector<16x1xf32> to vector<16x16xf32>
    %24 = arith.mulf %19, %23 : vector<16x16xf32>
    %25 = arith.truncf %24 : vector<16x16xf32> to vector<16x16xbf16>
    %cst_15 = arith.constant dense<0.000000e+00> : vector<16x16xf32>
    %26 = tpu.matmul %25, %11, %cst_15 {dimension_numbers = #tpu.dot_dimension_numbers<[1], [0], [0], [1], [0, 0, 1, 1], [], []>} : vector<16x16xbf16>, vector<16x16xbf16>, vector<16x16xf32> -> vector<16x16xf32>
    %27 = arith.truncf %26 : vector<16x16xf32> to vector<16x16xbf16>
    %c0_16 = arith.constant 0 : index
    %c0_17 = arith.constant 0 : index
    %28 = vector.load %arg9[%c0_16, %c0_17] : memref<16x64xbf16, #tpu.memory_space<vmem>>, vector<16x16xbf16>
    tpu.vector_store %arg9[%c0_16, %c0_17], %27 {strides = array<i32>} : memref<16x64xbf16, #tpu.memory_space<vmem>>, vector<16x16xbf16>,
    %29 = vector.extract_strided_slice %6 {offsets = [0, 16], sizes = [16, 16], strides = [1, 1]} : vector<16x64xbf16> to vector<16x16xbf16>
    %c1 = arith.constant 1 : index
    %c0_18 = arith.constant 0 : index
    %c0_19 = arith.constant 0 : index
    %30 = vector.load %arg2[%c1, %c0_18, %c0_19] : memref<4x16x16xbf16, #tpu.memory_space<vmem>>, vector<1x16x16xbf16>
    %31 = vector.shape_cast %30 : vector<1x16x16xbf16> to vector<16x16xbf16>
    %c1_20 = arith.constant 1 : index
    %c0_21 = arith.constant 0 : index
    %c0_22 = arith.constant 0 : index
    %32 = vector.load %arg3[%c1_20, %c0_21, %c0_22] : memref<4x16x16xbf16, #tpu.memory_space<vmem>>, vector<1x16x16xbf16>
    %33 = vector.shape_cast %32 : vector<1x16x16xbf16> to vector<16x16xbf16>
    %cst_23 = arith.constant dense<0.000000e+00> : vector<16x16xf32>
    %34 = tpu.matmul %29, %31, %cst_23 {dimension_numbers = #tpu.dot_dimension_numbers<[1], [0], [0], [1], [0, 0, 1, 1], [], []>} : vector<16x16xbf16>, vector<16x16xbf16>, vector<16x16xf32> -> vector<16x16xf32>
    %cst_24 = arith.constant 2.500000e-01 : f32
    %35 = vector.broadcast %cst_24 : f32 to vector<16x16xf32>
    %36 = arith.mulf %34, %35 : vector<16x16xf32>
    %cst_25 = arith.constant dense<0xFF800000> : vector<16xf32>
    %37 = vector.multi_reduction <maximumf>, %36, %cst_25 [1] : vector<16x16xf32> to vector<16xf32>
    %38 = vector.shape_cast %37 : vector<16xf32> to vector<16x1xf32>
    %39 = vector.broadcast %38 : vector<16x1xf32> to vector<16x16xf32>
    %40 = arith.subf %36, %39 : vector<16x16xf32>
    %41 = math.exp %40 : vector<16x16xf32>
    %cst_26 = arith.constant dense<0.000000e+00> : vector<16xf32>
    %42 = vector.multi_reduction <add>, %41, %cst_26 [1] : vector<16x16xf32> to vector<16xf32>
    %43 = vector.shape_cast %42 : vector<16xf32> to vector<16x1xf32>
    %44 = tpu.reciprocal %43 {approx = true} : vector<16x1xf32> -> vector<16x1xf32>
    %45 = vector.broadcast %44 : vector<16x1xf32> to vector<16x16xf32>
    %46 = arith.mulf %41, %45 : vector<16x16xf32>
    %47 = arith.truncf %46 : vector<16x16xf32> to vector<16x16xbf16>
    %cst_27 = arith.constant dense<0.000000e+00> : vector<16x16xf32>
    %48 = tpu.matmul %47, %33, %cst_27 {dimension_numbers = #tpu.dot_dimension_numbers<[1], [0], [0], [1], [0, 0, 1, 1], [], []>} : vector<16x16xbf16>, vector<16x16xbf16>, vector<16x16xf32> -> vector<16x16xf32>
    %49 = arith.truncf %48 : vector<16x16xf32> to vector<16x16xbf16>
    %c0_28 = arith.constant 0 : index
    %c16 = arith.constant 16 : index
    %50 = vector.load %arg9[%c0_28, %c16] : memref<16x64xbf16, #tpu.memory_space<vmem>>, vector<16x16xbf16>
    tpu.vector_store %arg9[%c0_28, %c16], %49 {strides = array<i32>} : memref<16x64xbf16, #tpu.memory_space<vmem>>, vector<16x16xbf16>,
    %51 = vector.extract_strided_slice %6 {offsets = [0, 32], sizes = [16, 16], strides = [1, 1]} : vector<16x64xbf16> to vector<16x16xbf16>
    %c2 = arith.constant 2 : index
    %c0_29 = arith.constant 0 : index
    %c0_30 = arith.constant 0 : index
    %52 = vector.load %arg2[%c2, %c0_29, %c0_30] : memref<4x16x16xbf16, #tpu.memory_space<vmem>>, vector<1x16x16xbf16>
    %53 = vector.shape_cast %52 : vector<1x16x16xbf16> to vector<16x16xbf16>
    %c2_31 = arith.constant 2 : index
    %c0_32 = arith.constant 0 : index
    %c0_33 = arith.constant 0 : index
    %54 = vector.load %arg3[%c2_31, %c0_32, %c0_33] : memref<4x16x16xbf16, #tpu.memory_space<vmem>>, vector<1x16x16xbf16>
    %55 = vector.shape_cast %54 : vector<1x16x16xbf16> to vector<16x16xbf16>
    %cst_34 = arith.constant dense<0.000000e+00> : vector<16x16xf32>
    %56 = tpu.matmul %51, %53, %cst_34 {dimension_numbers = #tpu.dot_dimension_numbers<[1], [0], [0], [1], [0, 0, 1, 1], [], []>} : vector<16x16xbf16>, vector<16x16xbf16>, vector<16x16xf32> -> vector<16x16xf32>
    %cst_35 = arith.constant 2.500000e-01 : f32
    %57 = vector.broadcast %cst_35 : f32 to vector<16x16xf32>
    %58 = arith.mulf %56, %57 : vector<16x16xf32>
    %cst_36 = arith.constant dense<0xFF800000> : vector<16xf32>
    %59 = vector.multi_reduction <maximumf>, %58, %cst_36 [1] : vector<16x16xf32> to vector<16xf32>
    %60 = vector.shape_cast %59 : vector<16xf32> to vector<16x1xf32>
    %61 = vector.broadcast %60 : vector<16x1xf32> to vector<16x16xf32>
    %62 = arith.subf %58, %61 : vector<16x16xf32>
    %63 = math.exp %62 : vector<16x16xf32>
    %cst_37 = arith.constant dense<0.000000e+00> : vector<16xf32>
    %64 = vector.multi_reduction <add>, %63, %cst_37 [1] : vector<16x16xf32> to vector<16xf32>
    %65 = vector.shape_cast %64 : vector<16xf32> to vector<16x1xf32>
    %66 = tpu.reciprocal %65 {approx = true} : vector<16x1xf32> -> vector<16x1xf32>
    %67 = vector.broadcast %66 : vector<16x1xf32> to vector<16x16xf32>
    %68 = arith.mulf %63, %67 : vector<16x16xf32>
    %69 = arith.truncf %68 : vector<16x16xf32> to vector<16x16xbf16>
    %cst_38 = arith.constant dense<0.000000e+00> : vector<16x16xf32>
    %70 = tpu.matmul %69, %55, %cst_38 {dimension_numbers = #tpu.dot_dimension_numbers<[1], [0], [0], [1], [0, 0, 1, 1], [], []>} : vector<16x16xbf16>, vector<16x16xbf16>, vector<16x16xf32> -> vector<16x16xf32>
    %71 = arith.truncf %70 : vector<16x16xf32> to vector<16x16xbf16>
    %c0_39 = arith.constant 0 : index
    %c32 = arith.constant 32 : index
    %72 = vector.load %arg9[%c0_39, %c32] : memref<16x64xbf16, #tpu.memory_space<vmem>>, vector<16x16xbf16>
    tpu.vector_store %arg9[%c0_39, %c32], %71 {strides = array<i32>} : memref<16x64xbf16, #tpu.memory_space<vmem>>, vector<16x16xbf16>,
    %73 = vector.extract_strided_slice %6 {offsets = [0, 48], sizes = [16, 16], strides = [1, 1]} : vector<16x64xbf16> to vector<16x16xbf16>
    %c3 = arith.constant 3 : index
    %c0_40 = arith.constant 0 : index
    %c0_41 = arith.constant 0 : index
    %74 = vector.load %arg2[%c3, %c0_40, %c0_41] : memref<4x16x16xbf16, #tpu.memory_space<vmem>>, vector<1x16x16xbf16>
    %75 = vector.shape_cast %74 : vector<1x16x16xbf16> to vector<16x16xbf16>
    %c3_42 = arith.constant 3 : index
    %c0_43 = arith.constant 0 : index
    %c0_44 = arith.constant 0 : index
    %76 = vector.load %arg3[%c3_42, %c0_43, %c0_44] : memref<4x16x16xbf16, #tpu.memory_space<vmem>>, vector<1x16x16xbf16>
    %77 = vector.shape_cast %76 : vector<1x16x16xbf16> to vector<16x16xbf16>
    %cst_45 = arith.constant dense<0.000000e+00> : vector<16x16xf32>
    %78 = tpu.matmul %73, %75, %cst_45 {dimension_numbers = #tpu.dot_dimension_numbers<[1], [0], [0], [1], [0, 0, 1, 1], [], []>} : vector<16x16xbf16>, vector<16x16xbf16>, vector<16x16xf32> -> vector<16x16xf32>
    %cst_46 = arith.constant 2.500000e-01 : f32
    %79 = vector.broadcast %cst_46 : f32 to vector<16x16xf32>
    %80 = arith.mulf %78, %79 : vector<16x16xf32>
    %cst_47 = arith.constant dense<0xFF800000> : vector<16xf32>
    %81 = vector.multi_reduction <maximumf>, %80, %cst_47 [1] : vector<16x16xf32> to vector<16xf32>
    %82 = vector.shape_cast %81 : vector<16xf32> to vector<16x1xf32>
    %83 = vector.broadcast %82 : vector<16x1xf32> to vector<16x16xf32>
    %84 = arith.subf %80, %83 : vector<16x16xf32>
    %85 = math.exp %84 : vector<16x16xf32>
    %cst_48 = arith.constant dense<0.000000e+00> : vector<16xf32>
    %86 = vector.multi_reduction <add>, %85, %cst_48 [1] : vector<16x16xf32> to vector<16xf32>
    %87 = vector.shape_cast %86 : vector<16xf32> to vector<16x1xf32>
    %88 = tpu.reciprocal %87 {approx = true} : vector<16x1xf32> -> vector<16x1xf32>
    %89 = vector.broadcast %88 : vector<16x1xf32> to vector<16x16xf32>
    %90 = arith.mulf %85, %89 : vector<16x16xf32>
    %91 = arith.truncf %90 : vector<16x16xf32> to vector<16x16xbf16>
    %cst_49 = arith.constant dense<0.000000e+00> : vector<16x16xf32>
    %92 = tpu.matmul %91, %77, %cst_49 {dimension_numbers = #tpu.dot_dimension_numbers<[1], [0], [0], [1], [0, 0, 1, 1], [], []>} : vector<16x16xbf16>, vector<16x16xbf16>, vector<16x16xf32> -> vector<16x16xf32>
    %93 = arith.truncf %92 : vector<16x16xf32> to vector<16x16xbf16>
    %c0_50 = arith.constant 0 : index
    %c48 = arith.constant 48 : index
    %94 = vector.load %arg9[%c0_50, %c48] : memref<16x64xbf16, #tpu.memory_space<vmem>>, vector<16x16xbf16>
    tpu.vector_store %arg9[%c0_50, %c48], %93 {strides = array<i32>} : memref<16x64xbf16, #tpu.memory_space<vmem>>, vector<16x16xbf16>,
    %c0_51 = arith.constant 0 : index
    %c0_52 = arith.constant 0 : index
    %95 = vector.load %arg9[%c0_51, %c0_52] : memref<16x64xbf16, #tpu.memory_space<vmem>>, vector<16x64xbf16>
    %c0_53 = arith.constant 0 : index
    %c0_54 = arith.constant 0 : index
    %96 = vector.load %arg6[%c0_53, %c0_54] : memref<64x128xbf16, #tpu.memory_space<vmem>>, vector<64x128xbf16>
    %cst_55 = arith.constant dense<0.000000e+00> : vector<16x128xf32>
    %97 = tpu.matmul %95, %96, %cst_55 {dimension_numbers = #tpu.dot_dimension_numbers<[1], [0], [0], [1], [0, 0, 1, 1], [], []>} : vector<16x64xbf16>, vector<64x128xbf16>, vector<16x128xf32> -> vector<16x128xf32>
    %c0_56 = arith.constant 0 : index
    %c0_57 = arith.constant 0 : index
    %98 = vector.load %arg7[%c0_56, %c0_57] : memref<1x128xf32, #tpu.memory_space<vmem>>, vector<1x128xf32>
    %99 = vector.broadcast %98 : vector<1x128xf32> to vector<16x128xf32>
    %100 = arith.addf %97, %99 : vector<16x128xf32>
    %c0_58 = arith.constant 0 : index
    %c0_59 = arith.constant 0 : index
    %101 = vector.load %arg8[%c0_58, %c0_59] : memref<16x128xf32, #tpu.memory_space<vmem>>, vector<16x128xf32>
    tpu.vector_store %arg8[%c0_58, %c0_59], %100 {strides = array<i32>} : memref<16x128xf32, #tpu.memory_space<vmem>>, vector<16x128xf32>,
    return
  }
  func.func @transform_0(%arg0: i32) -> (i32, i32) {
    %c0_i32 = arith.constant 0 : i32
    %c0_i32_0 = arith.constant 0 : i32
    return %arg0, %c0_i32 : i32, i32
  }
  func.func @transform_1(%arg0: i32) -> (i32, i32, i32) {
    %c0_i32 = arith.constant 0 : i32
    %c0_i32_0 = arith.constant 0 : i32
    %c0_i32_1 = arith.constant 0 : i32
    %c0_i32_2 = arith.constant 0 : i32
    return %c0_i32, %c0_i32_0, %c0_i32_1 : i32, i32, i32
  }
  func.func @transform_2(%arg0: i32) -> (i32, i32, i32) {
    %c0_i32 = arith.constant 0 : i32
    %c0_i32_0 = arith.constant 0 : i32
    %c0_i32_1 = arith.constant 0 : i32
    %c0_i32_2 = arith.constant 0 : i32
    return %c0_i32, %c0_i32_0, %c0_i32_1 : i32, i32, i32
  }
  func.func @transform_3(%arg0: i32) -> (i32, i32) {
    %c0_i32 = arith.constant 0 : i32
    %c0_i32_0 = arith.constant 0 : i32
    %c0_i32_1 = arith.constant 0 : i32
    return %c0_i32, %c0_i32_0 : i32, i32
  }
  func.func @transform_4(%arg0: i32) -> (i32, i32) {
    %c0_i32 = arith.constant 0 : i32
    %c0_i32_0 = arith.constant 0 : i32
    %c0_i32_1 = arith.constant 0 : i32
    return %c0_i32, %c0_i32_0 : i32, i32
  }
  func.func @transform_5(%arg0: i32) -> (i32, i32) {
    %c0_i32 = arith.constant 0 : i32
    %c0_i32_0 = arith.constant 0 : i32
    %c0_i32_1 = arith.constant 0 : i32
    return %c0_i32, %c0_i32_0 : i32, i32
  }
  func.func @transform_6(%arg0: i32) -> (i32, i32) {
    %c0_i32 = arith.constant 0 : i32
    %c0_i32_0 = arith.constant 0 : i32
    %c0_i32_1 = arith.constant 0 : i32
    return %c0_i32, %c0_i32_0 : i32, i32
  }
  func.func @transform_7(%arg0: i32) -> (i32, i32) {
    %c0_i32 = arith.constant 0 : i32
    %c0_i32_0 = arith.constant 0 : i32
    return %arg0, %c0_i32 : i32, i32
  }
}

</mosaic_0001>

<bundles_post_ra>
// kernel: tpu_custom_call.1
= control target key start
LH: loop header
LB: loop body
LE: loop exit
PB: predicated region body
PF: predicated region fallthrough
CT: control target
= control target key end

     0   :  { %12 = vsyncpa [#allocation4], 0  ;;  %s1379_s0 = inlined_call_operand.hbm [shape: bf16[16,32], index: 0, kind: input, shape index: {}]   ;;  %s1380_s1 = inlined_call_operand.hbm [shape: bf16[4,16,16], index: 1, kind: input, shape index: {}]   ;;  %s1381_s2 = inlined_call_operand.hbm [shape: bf16[4,16,16], index: 2, kind: input, shape index: {}]   ;;  %s1382_s3 = inlined_call_operand.hbm [shape: bf16[32,64], index: 3, kind: input, shape index: {}]   ;;  %s1383_s4 = inlined_call_operand.vmem [shape: f32[1,64], index: 4, kind: input, shape index: {}]   ;;  %s1384_s5 = inlined_call_operand.hbm [shape: bf16[64,128], index: 5, kind: input, shape index: {}]   ;;  %s1385_s6 = inlined_call_operand.vmem [shape: f32[1,128], index: 6, kind: input, shape index: {}]   ;;  %s1386_s7 = inlined_call_operand.hbm [shape: f32[16,128], index: 7, kind: output, shape index: {}]  }
   0x1   :  { %13 = vsyncpa [#allocation7], 0 }
   0x2   :  { %14 = vsyncpa [#allocation10], 0 }
   0x3   :  { %15 = vsyncpa [#allocation5], 0  ;;  %s1155_s24 = smov [#allocation6]   ;;  %s1156_s26 = smov [#allocation9]  }
   0x4   :  { %s33_s25 = sshll.u32 %s1155_s24, 4  ;;  %s57_s27 = sshll.u32 %s1156_s26, 4  ;;  %s34_s25 = int_to_ptr.vmem [resolvable:$true] %s33_s25  ;;  %s1213_s27 = int_to_ptr.vmem [resolvable:$true] %s57_s27 }
   0x5   :  { %s1015_s30 = scalar_lea.hbm %s1380_s1, 512 }
   0x6   :  { %p1016_p0 = scmp.ne.s32.totalorder %s1380_s1, %s1015_s30  ;;  %p1019_p1 = scmp.lt.u32.totalorder %s1015_s30, %s1380_s1 }
   0x8   :  { %p1021_p2 = pnand %p1019_p1, %p1016_p0 }
   0xa   :  { %1024 = shalt.err (!%p1021_p2)
}
   0xb   :  { %s1025_s12 = scalar_lea.vmem %s34_s25, 512  ;;  %p1030_p4 = scmp.lt.s32.totalorder %s34_s25, %s34_s25 }
   0xc   :  { %p1026_p3 = scmp.ne.s32.totalorder %s34_s25, %s1025_s12  ;;  %p1031_p5 = scmp.lt.s32.totalorder %s1025_s12, %s1025_s12 }
   0xe   :  { %p1032_p6 = por %p1031_p5, %p1030_p4 }
  0x10   :  { %p1033_p7 = pnand %p1032_p6, %p1026_p3 }
  0x12   :  { %1036 = shalt.err (!%p1033_p7)
}
  0x13   :  { %s1157_s13 = smov 64   ;;  %s1158_s14 = smov 4  }
  0x14   :  { %39 = dma.hbm_to_vmem [thread:$0]  %s1380_s1, 512, %s34_s25, [#allocation7], %s1157_s13, %s1157_s13, %s1158_s14  }
  0x15   :  { %s1037_s19 = scalar_lea.hbm %s1382_s3, 256 }
  0x16   :  { %p1038_p8 = scmp.ne.s32.totalorder %s1382_s3, %s1037_s19  ;;  %p1041_p9 = scmp.lt.u32.totalorder %s1037_s19, %s1382_s3 }
  0x18   :  { %p1043_p10 = pnand %p1041_p9, %p1038_p8 }
  0x1a   :  { %1046 = shalt.err (!%p1043_p10)
}
  0x1b   :  { %s1047_s24 = scalar_lea.vmem %s1213_s27, 256  ;;  %p1052_p12 = scmp.lt.s32.totalorder %s1213_s27, %s1213_s27 }
  0x1c   :  { %p1048_p11 = scmp.ne.s32.totalorder %s1213_s27, %s1047_s24  ;;  %p1053_p13 = scmp.lt.s32.totalorder %s1047_s24, %s1047_s24 }
  0x1e   :  { %p1054_p0 = por %p1053_p13, %p1052_p12 }
  0x20   :  { %p1055_p1 = pnand %p1054_p0, %p1048_p11 }
  0x22   :  { %1058 = shalt.err (!%p1055_p1)
}
  0x23   :  { %63 = dma.hbm_to_vmem [thread:$0]  %s1382_s3, 256, %s1213_s27, [#allocation10], %s1157_s13, %s1157_s13, %s1158_s14  }
  0x24   :  { %s1159_s26 = smov [#allocation3]   ;;  %s1160_s29 = smov [#allocation8]  }
  0x25   :  { %s21_s28 = sshll.u32 %s1159_s26, 4  ;;  %s45_s30 = sshll.u32 %s1160_s29, 4  ;;  %s22_s28 = int_to_ptr.vmem [resolvable:$true] %s21_s28  ;;  %s1250_s30 = int_to_ptr.vmem [resolvable:$true] %s45_s30 }
  0x26   :  { %s1059_s10 = scalar_lea.hbm %s1379_s0, 128 }
  0x27   :  { %p1060_p2 = scmp.ne.s32.totalorder %s1379_s0, %s1059_s10  ;;  %p1063_p3 = scmp.lt.u32.totalorder %s1059_s10, %s1379_s0 }
  0x29   :  { %p1065_p4 = pnand %p1063_p3, %p1060_p2 }
  0x2b   :  { %1068 = shalt.err (!%p1065_p4)
}
  0x2c   :  { %s1069_s3 = scalar_lea.vmem %s22_s28, 128  ;;  %p1074_p6 = scmp.lt.s32.totalorder %s22_s28, %s22_s28 }
  0x2d   :  { %p1070_p5 = scmp.ne.s32.totalorder %s22_s28, %s1069_s3  ;;  %p1075_p7 = scmp.lt.s32.totalorder %s1069_s3, %s1069_s3 }
  0x2f   :  { %p1076_p8 = por %p1075_p7, %p1074_p6 }
  0x31   :  { %p1077_p9 = pnand %p1076_p8, %p1070_p5 }
  0x33   :  { %1080 = shalt.err (!%p1077_p9)
}
  0x34   :  { %27 = dma.hbm_to_vmem [thread:$0]  %s1379_s0, 128, %s22_s28, [#allocation4], %s1157_s13, %s1157_s13, %s1158_s14  }
  0x35   :  { %s1081_s20 = scalar_lea.hbm %s1381_s2, 512 }
  0x36   :  { %p1082_p10 = scmp.ne.s32.totalorder %s1381_s2, %s1081_s20  ;;  %p1085_p11 = scmp.lt.u32.totalorder %s1081_s20, %s1381_s2 }
  0x38   :  { %p1087_p12 = pnand %p1085_p11, %p1082_p10 }
  0x3a   :  { %1090 = shalt.err (!%p1087_p12)
}
  0x3b   :  { %s1091_s1 = scalar_lea.vmem %s1250_s30, 512  ;;  %p1096_p0 = scmp.lt.s32.totalorder %s1250_s30, %s1250_s30 }
  0x3c   :  { %p1092_p13 = scmp.ne.s32.totalorder %s1250_s30, %s1091_s1  ;;  %p1097_p1 = scmp.lt.s32.totalorder %s1091_s1, %s1091_s1 }
  0x3e   :  { %p1098_p2 = por %p1097_p1, %p1096_p0 }
  0x40   :  { %p1099_p3 = pnand %p1098_p2, %p1092_p13 }
  0x42   :  { %1102 = shalt.err (!%p1099_p3)
}
  0x43   :  { %51 = dma.hbm_to_vmem [thread:$0]  %s1381_s2, 512, %s1250_s30, [#allocation7], %s1157_s13, %s1157_s13, %s1158_s14  }
  0x44   :  { %s1161_s26 = smov [#allocation11]   ;;  %s1103_s9 = scalar_lea.hbm %s1384_s5, 512 }
  0x45   :  { %s71_s28 = sshll.u32 %s1161_s26, 4  ;;  %p1104_p4 = scmp.ne.s32.totalorder %s1384_s5, %s1103_s9  ;;  %s72_s28 = int_to_ptr.vmem [resolvable:$true] %s71_s28 }
  0x46   :  { %p1107_p5 = scmp.lt.u32.totalorder %s1103_s9, %s1384_s5 }
  0x48   :  { %p1109_p6 = pnand %p1107_p5, %p1104_p4 }
  0x4a   :  { %1112 = shalt.err (!%p1109_p6)
}
  0x4b   :  { %s1113_s16 = scalar_lea.vmem %s72_s28, 512  ;;  %p1118_p8 = scmp.lt.s32.totalorder %s72_s28, %s72_s28 }
  0x4c   :  { %p1114_p7 = scmp.ne.s32.totalorder %s72_s28, %s1113_s16  ;;  %p1119_p9 = scmp.lt.s32.totalorder %s1113_s16, %s1113_s16 }
  0x4e   :  { %p1120_p10 = por %p1119_p9, %p1118_p8 }
  0x50   :  { %p1121_p11 = pnand %p1120_p10, %p1114_p7 }
  0x52   :  { %1124 = shalt.err (!%p1121_p11)
}
  0x53   :  { %77 = dma.hbm_to_vmem [thread:$0]  %s1384_s5, 512, %s72_s28, [#allocation10], %s1157_s13, %s1157_s13, %s1158_s14  }
  0x54   :  { %1147 = dma.done.wait [#allocation4], 128  }
  0x55   :  { %1148 = vsyncadd [#allocation4], 4294967168 }
  0x56   :  { %1149 = dma.done.wait [#allocation7], 1024  }
  0x57   :  { %1150 = vsyncadd [#allocation7], 4294966272 }
  0x58   :  { %1151 = dma.done.wait [#allocation10], 768  }
  0x59   :  { %1152 = vsyncadd [#allocation10], 4294966528  ;;  %v1162_v0 = vmov 0.0   ;;  %vm1163_vm0 = vmmov 0   ;;  %v968_v1 = vld [vmem:[#allocation9] sm:$0xff]   ;;  %v969_v2 = vld [vmem:[#allocation9 + $0x8] sm:$0xff]  }
  0x5a   :  { %882 = vmatprep.subr.bf16.mxu0 %v1162_v0  ;;  %886 = vmatprep.mubr.msk.bf16.mxu0 %vm1163_vm0, %v1162_v0  ;;  %v970_v3 = vld [vmem:[#allocation3] sm:$0xff]   ;;  %vm126_vm1 = vcmask 261120   ;;  %v971_v4 = vld [vmem:[#allocation6] sm:$0xff]   ;;  %v831_v5 = vld [vmem:[%s1383_s4] ss:$0 sm:$0xff]  ;;  %vm182_vm2 = vcmask 130048  }
  0x5b   :  { %890 = vmatprep.subr.bf16.mxu1 %v1162_v0  ;;  %892 = vmatprep.mubr.msk.bf16.mxu1 %vm1163_vm0, %v1162_v0  ;;  %s1164_s4 = smov 112   ;;  %v972_v31 = vld [vmem:[#allocation6 + $0x10] sm:$0xff]   ;;  %s1165_s14 = smov 96   ;;  %v973_v32 = vld [vmem:[#allocation8] sm:$0xff]   ;;  %v974_v35 = vld [vmem:[#allocation6 + $0x18] sm:$0xff]   ;;  %vm443_vm3 = vcmask 261248  }
  0x5c   :  { %883 = vmatpush3.bf16.msra.mxu0 %v968_v1  ;;  %891 = vmatpush3.bf16.msra.mxu1 %v971_v4  ;;  %s1166_s3 = smov 80   ;;  %v975_v42 = vld [vmem:[#allocation6 + $0x8] sm:$0xff]   ;;  %s1167_s27 = smov 16   ;;  %vm583_vm4 = vcmask 392448   ;;  %vm723_vm5 = vcmask 523648   ;;  %vm765_vm6 = vcmask 523264  }
  0x5d   :  { %884 = vmatprep.subr.bf16.mxu0 %v1162_v0  ;;  %896 = vmatprep.subr.bf16.mxu1 %v1162_v0  ;;  %s1168_s17 = smov 32   ;;  %s1169_s18 = smov 48  }
  0x5e   :  { %s1170_s21 = smov [#allocation12]  }
  0x5f   :  { %s817_s22 = sshll.u32 %s1170_s21, 4  ;;  %s818_s22 = int_to_ptr.vmem [resolvable:$true] %s817_s22 }
  0x60   :  { %885 = vmatpush3.bf16.msra.mxu0 %v969_v2  ;;  %s1125_s23 = scalar_lea.vmem %s818_s22, 256  ;;  %p1130_p13 = scmp.lt.s32.totalorder %s818_s22, %s818_s22 }
  0x61   :  { %914 = vmatprep.subr.bf16.mxu0 %v1162_v0  ;;  %p1126_p12 = scmp.ne.s32.totalorder %s818_s22, %s1125_s23  ;;  %p1131_p0 = scmp.lt.s32.totalorder %s1125_s23, %s1125_s23 }
  0x63   :  { %887 = vmatmul.mubr.msk.bf16.vlgmr.msra.gmra.mrb[0].mxu0 %vm126_vm1, %v970_v3  ;;  %p1132_p1 = por %p1131_p0, %p1130_p13 }
  0x64   :  { %916 = vmatprep.mubr.msk.bf16.mxu0 %vm1163_vm0, %v1162_v0  ;;  %915 = vmatpush3.bf16.msra.mxu0 %v972_v31 }
  0x65   :  { %926 = vmatprep.subr.bf16.mxu0 %v1162_v0  ;;  %p1133_p2 = pnand %p1132_p1, %p1126_p12 }
 0x136   :  { %v164_v6 = vpop.f32.mrb[0].mxu0 }
 0x137   :  { %v888_v7 = vpop.f32.mrb[1].mxu0  ;;  %v165_v9 = vadd.f32 %v831_v5, %v164_v6 }
 0x138   :  { %v167_v8 = vpop.f32.mrb[2].mxu0 }
 0x139   :  { %v168_v10 = vadd.f32 %v831_v5, %v167_v8  ;;  %v889_v11 = vpop.f32.mrb[3].mxu0 }
 0x13b   :  { %v171_v12 = vpack.c.bf16 %v168_v10, %v165_v9 }
 0x13d   :  { %893 = vmatmul.mubr.msk.bf16.vlgmr.msra.gmra.mrb[0].mxu1 %vm182_vm2, %v171_v12 }
 0x13e   :  { %898 = vmatprep.mubr.msk.bf16.mxu1 %vm1163_vm0, %v1162_v0  ;;  %897 = vmatpush3.bf16.msra.mxu1 %v973_v32 }
 0x13f   :  { %902 = vmatprep.subr.bf16.mxu1 %v1162_v0 }
 0x210   :  { %v220_v13 = vpop.f32.mrb[0].mxu1 }
 0x211   :  { %v227_v14 = vmul.f32 0.25, %v220_v13  ;;  %v894_v15 = vpop.f32.mrb[1].mxu1 }
 0x212   :  { %v223_v16 = vpop.f32.mrb[2].mxu1 }
 0x213   :  { %v228_v17 = vmul.f32 0.25, %v223_v16  ;;  %v895_v18 = vpop.f32.mrb[3].mxu1  ;;  %v229_v19 = vsel %vm182_vm2, %v227_v14, -inf }
 0x214   :  { %230 = vmax.xlane.f32.xlu0 %v229_v19 }
 0x215   :  { %v232_v20 = vsel %vm182_vm2, %v228_v17, -inf }
 0x218   :  { %233 = vmax.xlane.f32.xlu0 %v232_v20 }
 0x22e   :  { %311 = vrot.lane.b32.xlu0 %v171_v12, %s1164_s4 }
 0x2a1   :  { %v231_v21 = vpop.xlane.xlu0 %230 }
 0x2a2   :  { %v235_v22 = vsub.f32 %v227_v14, %v231_v21 }
 0x2a4   :  { %v237_v23 = vmul.f32 1.442695, %v235_v22 }
 0x2a5   :  { %v234_v24 = vpop.xlane.xlu0 %233 }
 0x2a6   :  { %983 = vpow2.f32 %v237_v23  ;;  %v236_v25 = vsub.f32 %v228_v17, %v234_v24 }
 0x2a8   :  { %v239_v26 = vmul.f32 1.442695, %v236_v25 }
 0x2a9   :  { %v312_v44 = vpop.permute.xlu0 %311 }
 0x2aa   :  { %985 = vpow2.f32 %v239_v26 }
 0x2b0   :  { %v984_v27 = vpop.eup %983 }
 0x2b1   :  { %v241_v28 = vsel %vm182_vm2, %v984_v27, 0.0 }
 0x2b2   :  { %242 = vadd.xlane.f32.xlu1 %v241_v28 }
 0x2b4   :  { %v986_v29 = vpop.eup %985 }
 0x2b5   :  { %v244_v30 = vsel %vm182_vm2, %v986_v29, 0.0 }
 0x2b6   :  { %245 = vadd.xlane.f32.xlu1 %v244_v30 }
 0x2c7   :  { %451 = vrot.lane.b32.xlu1 %v171_v12, %s1165_s14 }
 0x2cb   :  { %591 = vrot.lane.b32.xlu1 %v171_v12, %s1166_s3 }
 0x33f   :  { %v243_v33 = vpop.xlane.xlu1 %242 }
 0x340   :  { %987 = vrcp.f32 %v243_v33 }
 0x343   :  { %v246_v34 = vpop.xlane.xlu1 %245 }
 0x344   :  { %989 = vrcp.f32 %v246_v34 }
 0x347   :  { %v452_v36 = vpop.permute.xlu1 %451 }
 0x348   :  { %917 = vmatmul.mubr.msk.bf16.vlgmr.msra.gmra.mrb[4].mxu0 %vm182_vm2, %v452_v36 }
 0x349   :  { %927 = vmatpush3.bf16.msra.mxu0 %v974_v35  ;;  %928 = vmatprep.mubr.msk.bf16.mxu0 %vm1163_vm0, %v1162_v0 }
 0x34a   :  { %938 = vmatprep.subr.bf16.mxu0 %v1162_v0  ;;  %v988_v37 = vpop.eup %987 }
 0x34b   :  { %v249_v39 = vmul.f32 %v988_v37, %v984_v27  ;;  %v592_v41 = vpop.permute.xlu1 %591 }
 0x34e   :  { %v990_v38 = vpop.eup %989 }
 0x34f   :  { %v250_v40 = vmul.f32 %v990_v38, %v986_v29 }
 0x350   :  { %929 = vmatmul.mubr.msk.bf16.vlgmr.msra.gmra.mrb[8].mxu0 %vm182_vm2, %v592_v41  ;;  %v976_v41 = vld [vmem:[#allocation8 + $0x8] sm:$0xff]  }
 0x351   :  { %v251_v43 = vpack.c.bf16 %v250_v40, %v249_v39  ;;  %946 = vmatprep.mubr.msk.bf16.mxu0 %vm1163_vm0, %v1162_v0 }
 0x353   :  { %899 = vmatmul.mubr.msk.bf16.vlgmr.msra.gmra.mrb[4].mxu1 %vm182_vm2, %v251_v43 }
 0x354   :  { %903 = vmatpush3.bf16.msra.mxu1 %v975_v42  ;;  %904 = vmatprep.mubr.msk.bf16.mxu1 %vm1163_vm0, %v1162_v0 }
 0x355   :  { %908 = vmatprep.subr.bf16.mxu1 %v1162_v0 }
 0x35b   :  { %905 = vmatmul.mubr.msk.bf16.vlgmr.msra.gmra.mrb[8].mxu1 %vm182_vm2, %v312_v44 }
 0x35c   :  { %910 = vmatprep.mubr.msk.bf16.mxu1 %vm1163_vm0, %v1162_v0  ;;  %909 = vmatpush3.bf16.msra.mxu1 %v976_v41 }
 0x35d   :  { %920 = vmatprep.subr.bf16.mxu1 %v1162_v0 }
 0x41b   :  { %v496_v45 = vpop.f32.mrb[4].mxu0 }
 0x41c   :  { %v918_v46 = vpop.f32.mrb[5].mxu0  ;;  %v503_v3 = vmul.f32 0.25, %v496_v45 }
 0x41d   :  { %v499_v47 = vpop.f32.mrb[6].mxu0 }
 0x41e   :  { %v919_v48 = vpop.f32.mrb[7].mxu0  ;;  %v504_v6 = vmul.f32 0.25, %v499_v47  ;;  %v505_v7 = vsel %vm182_vm2, %v503_v3, -inf }
 0x420   :  { %v508_v9 = vsel %vm182_vm2, %v504_v6, -inf }
 0x423   :  { %v636_v49 = vpop.f32.mrb[8].mxu0 }
 0x424   :  { %v930_v50 = vpop.f32.mrb[9].mxu0  ;;  %v643_v62 = vmul.f32 0.25, %v636_v49 }
 0x425   :  { %v639_v51 = vpop.f32.mrb[10].mxu0 }
 0x426   :  { %v295_v52 = vpop.f32.mrb[4].mxu1  ;;  %v931_v53 = vpop.f32.mrb[11].mxu0  ;;  %v645_v5 = vsel %vm182_vm2, %v643_v62, -inf  ;;  %v644_v8 = vmul.f32 0.25, %v639_v51 }
 0x427   :  { %v900_v54 = vpop.f32.mrb[5].mxu1 }
 0x428   :  { %v298_v55 = vpop.f32.mrb[6].mxu1  ;;  %v648_v10 = vsel %vm182_vm2, %v644_v8, -inf }
 0x429   :  { %v302_v56 = vpack.c.bf16 %v298_v55, %v295_v52  ;;  %v901_v57 = vpop.f32.mrb[7].mxu1  ;;  %v977_v52 = vld [vmem:[#allocation8 + $0x10] sm:$0xff]  }
 0x42b   :  { %303 = vst.msk [vmem:[#allocation2] sm:$0xff] %vm182_vm2, %v302_v56 }
 0x42e   :  { %v356_v58 = vpop.f32.mrb[8].mxu1 }
 0x42f   :  { %v363_v59 = vmul.f32 0.25, %v356_v58  ;;  %v906_v60 = vpop.f32.mrb[9].mxu1  ;;  %v978_v58 = vld [vmem:[#allocation8 + $0x18] sm:$0xff]  }
 0x430   :  { %v359_v61 = vpop.f32.mrb[10].mxu1 }
 0x431   :  { %v364_v63 = vmul.f32 0.25, %v359_v61  ;;  %v907_v1 = vpop.f32.mrb[11].mxu1  ;;  %v365_v2 = vsel %vm182_vm2, %v363_v59, -inf }
 0x432   :  { %366 = vmax.xlane.f32.xlu1 %v365_v2 }
 0x433   :  { %v368_v4 = vsel %vm182_vm2, %v364_v63, -inf }
 0x434   :  { %369 = vmax.xlane.f32.xlu0 %v368_v4 }
 0x436   :  { %646 = vmax.xlane.f32.xlu1 %v645_v5 }
 0x438   :  { %506 = vmax.xlane.f32.xlu0 %v505_v7 }
 0x43c   :  { %509 = vmax.xlane.f32.xlu0 %v508_v9  ;;  %v981_v9 = vld [vmem:[#allocation11 + $0x10] sm:$0xff]  }
 0x440   :  { %649 = vmax.xlane.f32.xlu0 %v648_v10 }
 0x4bf   :  { %v367_v11 = vpop.xlane.xlu1 %366 }
 0x4c0   :  { %v371_v12 = vsub.f32 %v363_v59, %v367_v11 }
 0x4c1   :  { %v370_v13 = vpop.xlane.xlu0 %369 }
 0x4c2   :  { %v373_v14 = vmul.f32 1.442695, %v371_v12  ;;  %v372_v15 = vsub.f32 %v364_v63, %v370_v13  ;;  %v982_v12 = vld [vmem:[#allocation11 + $0x18] sm:$0xff]  }
 0x4c3   :  { %v647_v16 = vpop.xlane.xlu1 %646 }
 0x4c4   :  { %991 = vpow2.f32 %v373_v14  ;;  %v375_v17 = vmul.f32 1.442695, %v372_v15  ;;  %v651_v18 = vsub.f32 %v643_v62, %v647_v16 }
 0x4c5   :  { %v507_v19 = vpop.xlane.xlu0 %506 }
 0x4c6   :  { %993 = vpow2.f32 %v375_v17  ;;  %v511_v20 = vsub.f32 %v503_v3, %v507_v19  ;;  %v653_v21 = vmul.f32 1.442695, %v651_v18  ;;  %v979_v3 = vld [vmem:[#allocation11] sm:$0xff]  }
 0x4c7   :  { %939 = vmatpush3.bf16.msra.mxu0 %v979_v3 }
 0x4c8   :  { %v513_v22 = vmul.f32 1.442695, %v511_v20  ;;  %940 = vmatprep.subr.bf16.mxu0 %v1162_v0 }
 0x4c9   :  { %v510_v23 = vpop.xlane.xlu0 %509 }
 0x4ca   :  { %995 = vpow2.f32 %v513_v22  ;;  %v512_v24 = vsub.f32 %v504_v6, %v510_v23  ;;  %v980_v6 = vld [vmem:[#allocation11 + $0x8] sm:$0xff]  }
 0x4cb   :  { %997 = vpow2.f32 %v653_v21  ;;  %941 = vmatpush3.bf16.msra.mxu0 %v980_v6 }
 0x4cc   :  { %v515_v25 = vmul.f32 1.442695, %v512_v24  ;;  %942 = vmatprep.subr.bf16.mxu0 %v1162_v0  ;;  %v852_v24 = vld [vmem:[%s1385_s6] ss:$0 sm:$0xff] }
 0x4cd   :  { %v650_v26 = vpop.xlane.xlu0 %649 }
 0x4ce   :  { %v992_v27 = vpop.eup %991  ;;  %999 = vpow2.f32 %v515_v25  ;;  %v652_v28 = vsub.f32 %v644_v8, %v650_v26 }
 0x4cf   :  { %v377_v29 = vsel %vm182_vm2, %v992_v27, 0.0  ;;  %943 = vmatpush3.bf16.msra.mxu0 %v981_v9 }
 0x4d0   :  { %v994_v30 = vpop.eup %993  ;;  %v655_v31 = vmul.f32 1.442695, %v652_v28  ;;  %378 = vadd.xlane.f32.xlu1 %v377_v29  ;;  %944 = vmatprep.subr.bf16.mxu0 %v1162_v0 }
 0x4d1   :  { %v380_v32 = vsel %vm182_vm2, %v994_v30, 0.0 }
 0x4d2   :  { %1001 = vpow2.f32 %v655_v31  ;;  %381 = vadd.xlane.f32.xlu0 %v380_v32 }
 0x4d3   :  { %945 = vmatpush3.bf16.msra.mxu0 %v982_v12 }
 0x4d4   :  { %v996_v33 = vpop.eup %995 }
 0x4d5   :  { %v517_v34 = vsel %vm182_vm2, %v996_v33, 0.0  ;;  %v998_v35 = vpop.eup %997 }
 0x4d6   :  { %518 = vadd.xlane.f32.xlu1 %v517_v34  ;;  %v657_v37 = vsel %vm182_vm2, %v998_v35, 0.0 }
 0x4d8   :  { %v1000_v36 = vpop.eup %999 }
 0x4d9   :  { %v520_v38 = vsel %vm182_vm2, %v1000_v36, 0.0 }
 0x4da   :  { %658 = vadd.xlane.f32.xlu1 %v657_v37  ;;  %521 = vadd.xlane.f32.xlu0 %v520_v38 }
 0x4dc   :  { %v1002_v39 = vpop.eup %1001 }
 0x4dd   :  { %v660_v40 = vsel %vm182_vm2, %v1002_v39, 0.0 }
 0x4de   :  { %661 = vadd.xlane.f32.xlu0 %v660_v40 }
 0x55d   :  { %v379_v42 = vpop.xlane.xlu1 %378 }
 0x55e   :  { %1003 = vrcp.f32 %v379_v42 }
 0x55f   :  { %v382_v43 = vpop.xlane.xlu0 %381 }
 0x560   :  { %1005 = vrcp.f32 %v382_v43 }
 0x563   :  { %v519_v44 = vpop.xlane.xlu1 %518 }
 0x564   :  { %1007 = vrcp.f32 %v519_v44 }
 0x567   :  { %v522_v45 = vpop.xlane.xlu0 %521  ;;  %v659_v51 = vpop.xlane.xlu1 %658 }
 0x568   :  { %v1004_v46 = vpop.eup %1003  ;;  %1009 = vrcp.f32 %v522_v45 }
 0x569   :  { %v385_v48 = vmul.f32 %v1004_v46, %v992_v27 }
 0x56a   :  { %v1006_v47 = vpop.eup %1005 }
 0x56b   :  { %v386_v49 = vmul.f32 %v1006_v47, %v994_v30  ;;  %v662_v50 = vpop.xlane.xlu0 %661 }
 0x56c   :  { %1011 = vrcp.f32 %v662_v50 }
 0x56d   :  { %v387_v53 = vpack.c.bf16 %v386_v49, %v385_v48  ;;  %1013 = vrcp.f32 %v659_v51 }
 0x56e   :  { %v1008_v54 = vpop.eup %1007 }
 0x56f   :  { %911 = vmatmul.mubr.msk.bf16.vlgmr.msra.gmra.mrb[12].mxu1 %vm182_vm2, %v387_v53  ;;  %v525_v56 = vmul.f32 %v1008_v54, %v996_v33 }
 0x570   :  { %921 = vmatpush3.bf16.msra.mxu1 %v977_v52  ;;  %922 = vmatprep.mubr.msk.bf16.mxu1 %vm1163_vm0, %v1162_v0 }
 0x571   :  { %932 = vmatprep.subr.bf16.mxu1 %v1162_v0 }
 0x572   :  { %v1010_v55 = vpop.eup %1009 }
 0x573   :  { %v526_v57 = vmul.f32 %v1010_v55, %v1000_v36 }
 0x575   :  { %v527_v59 = vpack.c.bf16 %v526_v57, %v525_v56 }
 0x576   :  { %v1012_v60 = vpop.eup %1011 }
 0x577   :  { %923 = vmatmul.mubr.msk.bf16.vlgmr.msra.gmra.mrb[16].mxu1 %vm182_vm2, %v527_v59  ;;  %v1014_v61 = vpop.eup %1013  ;;  %v666_v62 = vmul.f32 %v1012_v60, %v1002_v39 }
 0x578   :  { %933 = vmatpush3.bf16.msra.mxu1 %v978_v58  ;;  %934 = vmatprep.mubr.msk.bf16.mxu1 %vm1163_vm0, %v1162_v0  ;;  %v665_v63 = vmul.f32 %v1014_v61, %v998_v35 }
 0x57a   :  { %v667_v1 = vpack.c.bf16 %v666_v62, %v665_v63 }
 0x57f   :  { %935 = vmatmul.mubr.msk.bf16.vlgmr.msra.gmra.mrb[20].mxu1 %vm182_vm2, %v667_v1 }
 0x642   :  { %v431_v2 = vpop.f32.mrb[12].mxu1 }
 0x643   :  { %v912_v4 = vpop.f32.mrb[13].mxu1 }
 0x644   :  { %v434_v5 = vpop.f32.mrb[14].mxu1 }
 0x645   :  { %v438_v7 = vpack.c.bf16 %v434_v5, %v431_v2  ;;  %v913_v8 = vpop.f32.mrb[15].mxu1 }
 0x647   :  { %440 = vrot.lane.b32.xlu1 %v438_v7, %s1167_s27 }
 0x64a   :  { %v571_v10 = vpop.f32.mrb[16].mxu1 }
 0x64b   :  { %v924_v11 = vpop.f32.mrb[17].mxu1 }
 0x64c   :  { %v574_v13 = vpop.f32.mrb[18].mxu1 }
 0x64d   :  { %v578_v14 = vpack.c.bf16 %v574_v13, %v571_v10  ;;  %v925_v15 = vpop.f32.mrb[19].mxu1 }
 0x64f   :  { %580 = vrot.lane.b32.xlu0 %v578_v14, %s1168_s17 }
 0x652   :  { %v711_v16 = vpop.f32.mrb[20].mxu1 }
 0x653   :  { %v936_v17 = vpop.f32.mrb[21].mxu1 }
 0x654   :  { %v714_v18 = vpop.f32.mrb[22].mxu1 }
 0x655   :  { %v718_v19 = vpack.c.bf16 %v714_v18, %v711_v16  ;;  %v937_v20 = vpop.f32.mrb[23].mxu1 }
 0x657   :  { %720 = vrot.lane.b32.xlu1 %v718_v19, %s1169_s18 }
 0x6b9   :  { %v441_v21 = vpop.permute.xlu1 %440 }
 0x6ba   :  { %444 = vst.msk [vmem:[#allocation2] sm:$0xff] %vm443_vm3, %v441_v21 }
 0x6c1   :  { %v581_v22 = vpop.permute.xlu0 %580 }
 0x6c2   :  { %584 = vst.msk [vmem:[#allocation2] sm:$0xff] %vm583_vm4, %v581_v22 }
 0x6c9   :  { %v721_v0 = vpop.permute.xlu1 %720 }
 0x6ca   :  { %724 = vst.msk [vmem:[#allocation2] sm:$0xff] %vm723_vm5, %v721_v0 }
 0x6d1   :  { %v725_v23 = vld [vmem:[#allocation2] sm:$0xff] }
 0x6d2   :  { %947 = vmatmul.mubr.msk.bf16.vlgmr.msra.gmra.mrb[12].mxu0 %vm765_vm6, %v725_v23 }
 0x7a5   :  { %v803_v25 = vpop.f32.mrb[12].mxu0 }
 0x7a6   :  { %v804_v26 = vadd.f32 %v852_v24, %v803_v25  ;;  %v948_v27 = vpop.f32.mrb[13].mxu0 }
 0x7a7   :  { %v806_v28 = vpop.f32.mrb[14].mxu0 }
 0x7a8   :  { %810 = vst [vmem:[#allocation12] sm:$0xff] %v804_v26  ;;  %v807_v29 = vadd.f32 %v852_v24, %v806_v28  ;;  %v949_v30 = vpop.f32.mrb[15].mxu0 }
 0x7aa   :  { %811 = vst [vmem:[#allocation12 + $0x8] sm:$0xff] %v807_v29 }
 0x7ab   :  { %1136 = shalt.err (!%p1133_p2)
}
 0x7ac   :  { %s1137_s1 = scalar_lea.hbm %s1386_s7, 256 }
 0x7ad   :  { %p1138_p3 = scmp.ne.s32.totalorder %s1386_s7, %s1137_s1  ;;  %p1141_p4 = scmp.lt.u32.totalorder %s1137_s1, %s1386_s7 }
 0x7af   :  { %p1143_p5 = pnand %p1141_p4, %p1138_p3 }
 0x7b1   :  { %1146 = shalt.err (!%p1143_p5)
}
 0x7b2   :  { %s1171_s29 = smov 128   ;;  %s1172_s8 = smov 8  }
 0x7b3   :  { %823 = dma.vmem_to_hbm [thread:$0]  %s818_s22, 256, %s1386_s7, [#allocation5], %s1171_s29, %s1171_s29, %s1172_s8  }
 0x7b4   :  { %1153 = dma.done.wait [#allocation5], 256  }
 0x7b5   :  { %1154 = vsyncadd [#allocation5], 4294967040 }
 0x7b6   :  { %827 = vsyncpa [#allocation4], 1 }
 0x7b7   :  { %828 = vsyncpa [#allocation7], 1 }
 0x7b8   :  { %829 = vsyncpa [#allocation10], 1 }
 0x7b9   :  { %830 = vsyncpa [#allocation5], 1 }

// kernel: tpu_custom_call.1
= control target key start
LH: loop header
LB: loop body
LE: loop exit
PB: predicated region body
PF: predicated region fallthrough
CT: control target
= control target key end

     0   :  { %12 = vsyncpa [#allocation4], 0  ;;  %s1379_s0 = inlined_call_operand.hbm [shape: bf16[16,32], index: 0, kind: input, shape index: {}]   ;;  %s1380_s1 = inlined_call_operand.hbm [shape: bf16[4,16,16], index: 1, kind: input, shape index: {}]   ;;  %s1381_s2 = inlined_call_operand.hbm [shape: bf16[4,16,16], index: 2, kind: input, shape index: {}]   ;;  %s1382_s3 = inlined_call_operand.hbm [shape: bf16[32,64], index: 3, kind: input, shape index: {}]   ;;  %s1383_s4 = inlined_call_operand.vmem [shape: f32[1,64], index: 4, kind: input, shape index: {}]   ;;  %s1384_s5 = inlined_call_operand.hbm [shape: bf16[64,128], index: 5, kind: input, shape index: {}]   ;;  %s1385_s6 = inlined_call_operand.vmem [shape: f32[1,128], index: 6, kind: input, shape index: {}]   ;;  %s1386_s7 = inlined_call_operand.hbm [shape: f32[16,128], index: 7, kind: output, shape index: {}]  }
   0x1   :  { %13 = vsyncpa [#allocation7], 0 }
   0x2   :  { %14 = vsyncpa [#allocation10], 0 }
   0x3   :  { %15 = vsyncpa [#allocation5], 0  ;;  %s1155_s24 = smov [#allocation6]   ;;  %s1156_s26 = smov [#allocation9]  }
   0x4   :  { %s33_s25 = sshll.u32 %s1155_s24, 4  ;;  %s57_s27 = sshll.u32 %s1156_s26, 4  ;;  %s34_s25 = int_to_ptr.vmem [resolvable:$true] %s33_s25  ;;  %s1213_s27 = int_to_ptr.vmem [resolvable:$true] %s57_s27 }
   0x5   :  { %s1015_s30 = scalar_lea.hbm %s1380_s1, 512 }
   0x6   :  { %p1016_p0 = scmp.ne.s32.totalorder %s1380_s1, %s1015_s30  ;;  %p1019_p1 = scmp.lt.u32.totalorder %s1015_s30, %s1380_s1 }
   0x8   :  { %p1021_p2 = pnand %p1019_p1, %p1016_p0 }
   0xa   :  { %1024 = shalt.err (!%p1021_p2)
}
   0xb   :  { %s1025_s12 = scalar_lea.vmem %s34_s25, 512  ;;  %p1030_p4 = scmp.lt.s32.totalorder %s34_s25, %s34_s25 }
   0xc   :  { %p1026_p3 = scmp.ne.s32.totalorder %s34_s25, %s1025_s12  ;;  %p1031_p5 = scmp.lt.s32.totalorder %s1025_s12, %s1025_s12 }
   0xe   :  { %p1032_p6 = por %p1031_p5, %p1030_p4 }
  0x10   :  { %p1033_p7 = pnand %p1032_p6, %p1026_p3 }
  0x12   :  { %1036 = shalt.err (!%p1033_p7)
}
  0x13   :  { %s1157_s13 = smov 64   ;;  %s1158_s14 = smov 4  }
  0x14   :  { %39 = dma.hbm_to_vmem [thread:$0]  %s1380_s1, 512, %s34_s25, [#allocation7], %s1157_s13, %s1157_s13, %s1158_s14  }
  0x15   :  { %s1037_s19 = scalar_lea.hbm %s1382_s3, 256 }
  0x16   :  { %p1038_p8 = scmp.ne.s32.totalorder %s1382_s3, %s1037_s19  ;;  %p1041_p9 = scmp.lt.u32.totalorder %s1037_s19, %s1382_s3 }
  0x18   :  { %p1043_p10 = pnand %p1041_p9, %p1038_p8 }
  0x1a   :  { %1046 = shalt.err (!%p1043_p10)
}
  0x1b   :  { %s1047_s24 = scalar_lea.vmem %s1213_s27, 256  ;;  %p1052_p12 = scmp.lt.s32.totalorder %s1213_s27, %s1213_s27 }
  0x1c   :  { %p1048_p11 = scmp.ne.s32.totalorder %s1213_s27, %s1047_s24  ;;  %p1053_p13 = scmp.lt.s32.totalorder %s1047_s24, %s1047_s24 }
  0x1e   :  { %p1054_p0 = por %p1053_p13, %p1052_p12 }
  0x20   :  { %p1055_p1 = pnand %p1054_p0, %p1048_p11 }
  0x22   :  { %1058 = shalt.err (!%p1055_p1)
}
  0x23   :  { %63 = dma.hbm_to_vmem [thread:$0]  %s1382_s3, 256, %s1213_s27, [#allocation10], %s1157_s13, %s1157_s13, %s1158_s14  }
  0x24   :  { %s1159_s26 = smov [#allocation3]   ;;  %s1160_s29 = smov [#allocation8]  }
  0x25   :  { %s21_s28 = sshll.u32 %s1159_s26, 4  ;;  %s45_s30 = sshll.u32 %s1160_s29, 4  ;;  %s22_s28 = int_to_ptr.vmem [resolvable:$true] %s21_s28  ;;  %s1250_s30 = int_to_ptr.vmem [resolvable:$true] %s45_s30 }
  0x26   :  { %s1059_s10 = scalar_lea.hbm %s1379_s0, 128 }
  0x27   :  { %p1060_p2 = scmp.ne.s32.totalorder %s1379_s0, %s1059_s10  ;;  %p1063_p3 = scmp.lt.u32.totalorder %s1059_s10, %s1379_s0 }
  0x29   :  { %p1065_p4 = pnand %p1063_p3, %p1060_p2 }
  0x2b   :  { %1068 = shalt.err (!%p1065_p4)
}
  0x2c   :  { %s1069_s3 = scalar_lea.vmem %s22_s28, 128  ;;  %p1074_p6 = scmp.lt.s32.totalorder %s22_s28, %s22_s28 }
  0x2d   :  { %p1070_p5 = scmp.ne.s32.totalorder %s22_s28, %s1069_s3  ;;  %p1075_p7 = scmp.lt.s32.totalorder %s1069_s3, %s1069_s3 }
  0x2f   :  { %p1076_p8 = por %p1075_p7, %p1074_p6 }
  0x31   :  { %p1077_p9 = pnand %p1076_p8, %p1070_p5 }
  0x33   :  { %1080 = shalt.err (!%p1077_p9)
}
  0x34   :  { %27 = dma.hbm_to_vmem [thread:$0]  %s1379_s0, 128, %s22_s28, [#allocation4], %s1157_s13, %s1157_s13, %s1158_s14  }
  0x35   :  { %s1081_s20 = scalar_lea.hbm %s1381_s2, 512 }
  0x36   :  { %p1082_p10 = scmp.ne.s32.totalorder %s1381_s2, %s1081_s20  ;;  %p1085_p11 = scmp.lt.u32.totalorder %s1081_s20, %s1381_s2 }
  0x38   :  { %p1087_p12 = pnand %p1085_p11, %p1082_p10 }
  0x3a   :  { %1090 = shalt.err (!%p1087_p12)
}
  0x3b   :  { %s1091_s1 = scalar_lea.vmem %s1250_s30, 512  ;;  %p1096_p0 = scmp.lt.s32.totalorder %s1250_s30, %s1250_s30 }
  0x3c   :  { %p1092_p13 = scmp.ne.s32.totalorder %s1250_s30, %s1091_s1  ;;  %p1097_p1 = scmp.lt.s32.totalorder %s1091_s1, %s1091_s1 }
  0x3e   :  { %p1098_p2 = por %p1097_p1, %p1096_p0 }
  0x40   :  { %p1099_p3 = pnand %p1098_p2, %p1092_p13 }
  0x42   :  { %1102 = shalt.err (!%p1099_p3)
}
  0x43   :  { %51 = dma.hbm_to_vmem [thread:$0]  %s1381_s2, 512, %s1250_s30, [#allocation7], %s1157_s13, %s1157_s13, %s1158_s14  }
  0x44   :  { %s1161_s26 = smov [#allocation11]   ;;  %s1103_s9 = scalar_lea.hbm %s1384_s5, 512 }
  0x45   :  { %s71_s28 = sshll.u32 %s1161_s26, 4  ;;  %p1104_p4 = scmp.ne.s32.totalorder %s1384_s5, %s1103_s9  ;;  %s72_s28 = int_to_ptr.vmem [resolvable:$true] %s71_s28 }
  0x46   :  { %p1107_p5 = scmp.lt.u32.totalorder %s1103_s9, %s1384_s5 }
  0x48   :  { %p1109_p6 = pnand %p1107_p5, %p1104_p4 }
  0x4a   :  { %1112 = shalt.err (!%p1109_p6)
}
  0x4b   :  { %s1113_s16 = scalar_lea.vmem %s72_s28, 512  ;;  %p1118_p8 = scmp.lt.s32.totalorder %s72_s28, %s72_s28 }
  0x4c   :  { %p1114_p7 = scmp.ne.s32.totalorder %s72_s28, %s1113_s16  ;;  %p1119_p9 = scmp.lt.s32.totalorder %s1113_s16, %s1113_s16 }
  0x4e   :  { %p1120_p10 = por %p1119_p9, %p1118_p8 }
  0x50   :  { %p1121_p11 = pnand %p1120_p10, %p1114_p7 }
  0x52   :  { %1124 = shalt.err (!%p1121_p11)
}
  0x53   :  { %77 = dma.hbm_to_vmem [thread:$0]  %s1384_s5, 512, %s72_s28, [#allocation10], %s1157_s13, %s1157_s13, %s1158_s14  }
  0x54   :  { %1147 = dma.done.wait [#allocation4], 128  }
  0x55   :  { %1148 = vsyncadd [#allocation4], 4294967168 }
  0x56   :  { %1149 = dma.done.wait [#allocation7], 1024  }
  0x57   :  { %1150 = vsyncadd [#allocation7], 4294966272 }
  0x58   :  { %1151 = dma.done.wait [#allocation10], 768  }
  0x59   :  { %1152 = vsyncadd [#allocation10], 4294966528  ;;  %v1162_v0 = vmov 0.0   ;;  %vm1163_vm0 = vmmov 0   ;;  %v968_v1 = vld [vmem:[#allocation9] sm:$0xff]   ;;  %v969_v2 = vld [vmem:[#allocation9 + $0x8] sm:$0xff]  }
  0x5a   :  { %882 = vmatprep.subr.bf16.mxu0 %v1162_v0  ;;  %886 = vmatprep.mubr.msk.bf16.mxu0 %vm1163_vm0, %v1162_v0  ;;  %v970_v3 = vld [vmem:[#allocation3] sm:$0xff]   ;;  %vm126_vm1 = vcmask 261120   ;;  %v971_v4 = vld [vmem:[#allocation6] sm:$0xff]   ;;  %v831_v5 = vld [vmem:[%s1383_s4] ss:$0 sm:$0xff]  ;;  %vm182_vm2 = vcmask 130048  }
  0x5b   :  { %890 = vmatprep.subr.bf16.mxu1 %v1162_v0  ;;  %892 = vmatprep.mubr.msk.bf16.mxu1 %vm1163_vm0, %v1162_v0  ;;  %s1164_s4 = smov 112   ;;  %v972_v31 = vld [vmem:[#allocation6 + $0x10] sm:$0xff]   ;;  %s1165_s14 = smov 96   ;;  %v973_v32 = vld [vmem:[#allocation8] sm:$0xff]   ;;  %v974_v35 = vld [vmem:[#allocation6 + $0x18] sm:$0xff]   ;;  %vm443_vm3 = vcmask 261248  }
  0x5c   :  { %883 = vmatpush3.bf16.msra.mxu0 %v968_v1  ;;  %891 = vmatpush3.bf16.msra.mxu1 %v971_v4  ;;  %s1166_s3 = smov 80   ;;  %v975_v42 = vld [vmem:[#allocation6 + $0x8] sm:$0xff]   ;;  %s1167_s27 = smov 16   ;;  %vm583_vm4 = vcmask 392448   ;;  %vm723_vm5 = vcmask 523648   ;;  %vm765_vm6 = vcmask 523264  }
  0x5d   :  { %884 = vmatprep.subr.bf16.mxu0 %v1162_v0  ;;  %896 = vmatprep.subr.bf16.mxu1 %v1162_v0  ;;  %s1168_s17 = smov 32   ;;  %s1169_s18 = smov 48  }
  0x5e   :  { %s1170_s21 = smov [#allocation12]  }
  0x5f   :  { %s817_s22 = sshll.u32 %s1170_s21, 4  ;;  %s818_s22 = int_to_ptr.vmem [resolvable:$true] %s817_s22 }
  0x60   :  { %885 = vmatpush3.bf16.msra.mxu0 %v969_v2  ;;  %s1125_s23 = scalar_lea.vmem %s818_s22, 256  ;;  %p1130_p13 = scmp.lt.s32.totalorder %s818_s22, %s818_s22 }
  0x61   :  { %914 = vmatprep.subr.bf16.mxu0 %v1162_v0  ;;  %p1126_p12 = scmp.ne.s32.totalorder %s818_s22, %s1125_s23  ;;  %p1131_p0 = scmp.lt.s32.totalorder %s1125_s23, %s1125_s23 }
  0x63   :  { %887 = vmatmul.mubr.msk.bf16.vlgmr.msra.gmra.mrb[0].mxu0 %vm126_vm1, %v970_v3  ;;  %p1132_p1 = por %p1131_p0, %p1130_p13 }
  0x64   :  { %916 = vmatprep.mubr.msk.bf16.mxu0 %vm1163_vm0, %v1162_v0  ;;  %915 = vmatpush3.bf16.msra.mxu0 %v972_v31 }
  0x65   :  { %926 = vmatprep.subr.bf16.mxu0 %v1162_v0  ;;  %p1133_p2 = pnand %p1132_p1, %p1126_p12 }
 0x136   :  { %v164_v6 = vpop.f32.mrb[0].mxu0 }
 0x137   :  { %v888_v7 = vpop.f32.mrb[1].mxu0  ;;  %v165_v9 = vadd.f32 %v831_v5, %v164_v6 }
 0x138   :  { %v167_v8 = vpop.f32.mrb[2].mxu0 }
 0x139   :  { %v168_v10 = vadd.f32 %v831_v5, %v167_v8  ;;  %v889_v11 = vpop.f32.mrb[3].mxu0 }
 0x13b   :  { %v171_v12 = vpack.c.bf16 %v168_v10, %v165_v9 }
 0x13d   :  { %893 = vmatmul.mubr.msk.bf16.vlgmr.msra.gmra.mrb[0].mxu1 %vm182_vm2, %v171_v12 }
 0x13e   :  { %898 = vmatprep.mubr.msk.bf16.mxu1 %vm1163_vm0, %v1162_v0  ;;  %897 = vmatpush3.bf16.msra.mxu1 %v973_v32 }
 0x13f   :  { %902 = vmatprep.subr.bf16.mxu1 %v1162_v0 }
 0x210   :  { %v220_v13 = vpop.f32.mrb[0].mxu1 }
 0x211   :  { %v227_v14 = vmul.f32 0.25, %v220_v13  ;;  %v894_v15 = vpop.f32.mrb[1].mxu1 }
 0x212   :  { %v223_v16 = vpop.f32.mrb[2].mxu1 }
 0x213   :  { %v228_v17 = vmul.f32 0.25, %v223_v16  ;;  %v895_v18 = vpop.f32.mrb[3].mxu1  ;;  %v229_v19 = vsel %vm182_vm2, %v227_v14, -inf }
 0x214   :  { %230 = vmax.xlane.f32.xlu0 %v229_v19 }
 0x215   :  { %v232_v20 = vsel %vm182_vm2, %v228_v17, -inf }
 0x218   :  { %233 = vmax.xlane.f32.xlu0 %v232_v20 }
 0x22e   :  { %311 = vrot.lane.b32.xlu0 %v171_v12, %s1164_s4 }
 0x2a1   :  { %v231_v21 = vpop.xlane.xlu0 %230 }
 0x2a2   :  { %v235_v22 = vsub.f32 %v227_v14, %v231_v21 }
 0x2a4   :  { %v237_v23 = vmul.f32 1.442695, %v235_v22 }
 0x2a5   :  { %v234_v24 = vpop.xlane.xlu0 %233 }
 0x2a6   :  { %983 = vpow2.f32 %v237_v23  ;;  %v236_v25 = vsub.f32 %v228_v17, %v234_v24 }
 0x2a8   :  { %v239_v26 = vmul.f32 1.442695, %v236_v25 }
 0x2a9   :  { %v312_v44 = vpop.permute.xlu0 %311 }
 0x2aa   :  { %985 = vpow2.f32 %v239_v26 }
 0x2b0   :  { %v984_v27 = vpop.eup %983 }
 0x2b1   :  { %v241_v28 = vsel %vm182_vm2, %v984_v27, 0.0 }
 0x2b2   :  { %242 = vadd.xlane.f32.xlu1 %v241_v28 }
 0x2b4   :  { %v986_v29 = vpop.eup %985 }
 0x2b5   :  { %v244_v30 = vsel %vm182_vm2, %v986_v29, 0.0 }
 0x2b6   :  { %245 = vadd.xlane.f32.xlu1 %v244_v30 }
 0x2c7   :  { %451 = vrot.lane.b32.xlu1 %v171_v12, %s1165_s14 }
 0x2cb   :  { %591 = vrot.lane.b32.xlu1 %v171_v12, %s1166_s3 }
 0x33f   :  { %v243_v33 = vpop.xlane.xlu1 %242 }
 0x340   :  { %987 = vrcp.f32 %v243_v33 }
 0x343   :  { %v246_v34 = vpop.xlane.xlu1 %245 }
 0x344   :  { %989 = vrcp.f32 %v246_v34 }
 0x347   :  { %v452_v36 = vpop.permute.xlu1 %451 }
 0x348   :  { %917 = vmatmul.mubr.msk.bf16.vlgmr.msra.gmra.mrb[4].mxu0 %vm182_vm2, %v452_v36 }
 0x349   :  { %927 = vmatpush3.bf16.msra.mxu0 %v974_v35  ;;  %928 = vmatprep.mubr.msk.bf16.mxu0 %vm1163_vm0, %v1162_v0 }
 0x34a   :  { %938 = vmatprep.subr.bf16.mxu0 %v1162_v0  ;;  %v988_v37 = vpop.eup %987 }
 0x34b   :  { %v249_v39 = vmul.f32 %v988_v37, %v984_v27  ;;  %v592_v41 = vpop.permute.xlu1 %591 }
 0x34e   :  { %v990_v38 = vpop.eup %989 }
 0x34f   :  { %v250_v40 = vmul.f32 %v990_v38, %v986_v29 }
 0x350   :  { %929 = vmatmul.mubr.msk.bf16.vlgmr.msra.gmra.mrb[8].mxu0 %vm182_vm2, %v592_v41  ;;  %v976_v41 = vld [vmem:[#allocation8 + $0x8] sm:$0xff]  }
 0x351   :  { %v251_v43 = vpack.c.bf16 %v250_v40, %v249_v39  ;;  %946 = vmatprep.mubr.msk.bf16.mxu0 %vm1163_vm0, %v1162_v0 }
 0x353   :  { %899 = vmatmul.mubr.msk.bf16.vlgmr.msra.gmra.mrb[4].mxu1 %vm182_vm2, %v251_v43 }
 0x354   :  { %903 = vmatpush3.bf16.msra.mxu1 %v975_v42  ;;  %904 = vmatprep.mubr.msk.bf16.mxu1 %vm1163_vm0, %v1162_v0 }
 0x355   :  { %908 = vmatprep.subr.bf16.mxu1 %v1162_v0 }
 0x35b   :  { %905 = vmatmul.mubr.msk.bf16.vlgmr.msra.gmra.mrb[8].mxu1 %vm182_vm2, %v312_v44 }
 0x35c   :  { %910 = vmatprep.mubr.msk.bf16.mxu1 %vm1163_vm0, %v1162_v0  ;;  %909 = vmatpush3.bf16.msra.mxu1 %v976_v41 }
 0x35d   :  { %920 = vmatprep.subr.bf16.mxu1 %v1162_v0 }
 0x41b   :  { %v496_v45 = vpop.f32.mrb[4].mxu0 }
 0x41c   :  { %v918_v46 = vpop.f32.mrb[5].mxu0  ;;  %v503_v3 = vmul.f32 0.25, %v496_v45 }
 0x41d   :  { %v499_v47 = vpop.f32.mrb[6].mxu0 }
 0x41e   :  { %v919_v48 = vpop.f32.mrb[7].mxu0  ;;  %v504_v6 = vmul.f32 0.25, %v499_v47  ;;  %v505_v7 = vsel %vm182_vm2, %v503_v3, -inf }
 0x420   :  { %v508_v9 = vsel %vm182_vm2, %v504_v6, -inf }
 0x423   :  { %v636_v49 = vpop.f32.mrb[8].mxu0 }
 0x424   :  { %v930_v50 = vpop.f32.mrb[9].mxu0  ;;  %v643_v62 = vmul.f32 0.25, %v636_v49 }
 0x425   :  { %v639_v51 = vpop.f32.mrb[10].mxu0 }
 0x426   :  { %v295_v52 = vpop.f32.mrb[4].mxu1  ;;  %v931_v53 = vpop.f32.mrb[11].mxu0  ;;  %v645_v5 = vsel %vm182_vm2, %v643_v62, -inf  ;;  %v644_v8 = vmul.f32 0.25, %v639_v51 }
 0x427   :  { %v900_v54 = vpop.f32.mrb[5].mxu1 }
 0x428   :  { %v298_v55 = vpop.f32.mrb[6].mxu1  ;;  %v648_v10 = vsel %vm182_vm2, %v644_v8, -inf }
 0x429   :  { %v302_v56 = vpack.c.bf16 %v298_v55, %v295_v52  ;;  %v901_v57 = vpop.f32.mrb[7].mxu1  ;;  %v977_v52 = vld [vmem:[#allocation8 + $0x10] sm:$0xff]  }
 0x42b   :  { %303 = vst.msk [vmem:[#allocation2] sm:$0xff] %vm182_vm2, %v302_v56 }
 0x42e   :  { %v356_v58 = vpop.f32.mrb[8].mxu1 }
 0x42f   :  { %v363_v59 = vmul.f32 0.25, %v356_v58  ;;  %v906_v60 = vpop.f32.mrb[9].mxu1  ;;  %v978_v58 = vld [vmem:[#allocation8 + $0x18] sm:$0xff]  }
 0x430   :  { %v359_v61 = vpop.f32.mrb[10].mxu1 }
 0x431   :  { %v364_v63 = vmul.f32 0.25, %v359_v61  ;;  %v907_v1 = vpop.f32.mrb[11].mxu1  ;;  %v365_v2 = vsel %vm182_vm2, %v363_v59, -inf }
 0x432   :  { %366 = vmax.xlane.f32.xlu1 %v365_v2 }
 0x433   :  { %v368_v4 = vsel %vm182_vm2, %v364_v63, -inf }
 0x434   :  { %369 = vmax.xlane.f32.xlu0 %v368_v4 }
 0x436   :  { %646 = vmax.xlane.f32.xlu1 %v645_v5 }
 0x438   :  { %506 = vmax.xlane.f32.xlu0 %v505_v7 }
 0x43c   :  { %509 = vmax.xlane.f32.xlu0 %v508_v9  ;;  %v981_v9 = vld [vmem:[#allocation11 + $0x10] sm:$0xff]  }
 0x440   :  { %649 = vmax.xlane.f32.xlu0 %v648_v10 }
 0x4bf   :  { %v367_v11 = vpop.xlane.xlu1 %366 }
 0x4c0   :  { %v371_v12 = vsub.f32 %v363_v59, %v367_v11 }
 0x4c1   :  { %v370_v13 = vpop.xlane.xlu0 %369 }
 0x4c2   :  { %v373_v14 = vmul.f32 1.442695, %v371_v12  ;;  %v372_v15 = vsub.f32 %v364_v63, %v370_v13  ;;  %v982_v12 = vld [vmem:[#allocation11 + $0x18] sm:$0xff]  }
 0x4c3   :  { %v647_v16 = vpop.xlane.xlu1 %646 }
 0x4c4   :  { %991 = vpow2.f32 %v373_v14  ;;  %v375_v17 = vmul.f32 1.442695, %v372_v15  ;;  %v651_v18 = vsub.f32 %v643_v62, %v647_v16 }
 0x4c5   :  { %v507_v19 = vpop.xlane.xlu0 %506 }
 0x4c6   :  { %993 = vpow2.f32 %v375_v17  ;;  %v511_v20 = vsub.f32 %v503_v3, %v507_v19  ;;  %v653_v21 = vmul.f32 1.442695, %v651_v18  ;;  %v979_v3 = vld [vmem:[#allocation11] sm:$0xff]  }
 0x4c7   :  { %939 = vmatpush3.bf16.msra.mxu0 %v979_v3 }
 0x4c8   :  { %v513_v22 = vmul.f32 1.442695, %v511_v20  ;;  %940 = vmatprep.subr.bf16.mxu0 %v1162_v0 }
 0x4c9   :  { %v510_v23 = vpop.xlane.xlu0 %509 }
 0x4ca   :  { %995 = vpow2.f32 %v513_v22  ;;  %v512_v24 = vsub.f32 %v504_v6, %v510_v23  ;;  %v980_v6 = vld [vmem:[#allocation11 + $0x8] sm:$0xff]  }
 0x4cb   :  { %997 = vpow2.f32 %v653_v21  ;;  %941 = vmatpush3.bf16.msra.mxu0 %v980_v6 }
 0x4cc   :  { %v515_v25 = vmul.f32 1.442695, %v512_v24  ;;  %942 = vmatprep.subr.bf16.mxu0 %v1162_v0  ;;  %v852_v24 = vld [vmem:[%s1385_s6] ss:$0 sm:$0xff] }
 0x4cd   :  { %v650_v26 = vpop.xlane.xlu0 %649 }
 0x4ce   :  { %v992_v27 = vpop.eup %991  ;;  %999 = vpow2.f32 %v515_v25  ;;  %v652_v28 = vsub.f32 %v644_v8, %v650_v26 }
 0x4cf   :  { %v377_v29 = vsel %vm182_vm2, %v992_v27, 0.0  ;;  %943 = vmatpush3.bf16.msra.mxu0 %v981_v9 }
 0x4d0   :  { %v994_v30 = vpop.eup %993  ;;  %v655_v31 = vmul.f32 1.442695, %v652_v28  ;;  %378 = vadd.xlane.f32.xlu1 %v377_v29  ;;  %944 = vmatprep.subr.bf16.mxu0 %v1162_v0 }
 0x4d1   :  { %v380_v32 = vsel %vm182_vm2, %v994_v30, 0.0 }
 0x4d2   :  { %1001 = vpow2.f32 %v655_v31  ;;  %381 = vadd.xlane.f32.xlu0 %v380_v32 }
 0x4d3   :  { %945 = vmatpush3.bf16.msra.mxu0 %v982_v12 }
 0x4d4   :  { %v996_v33 = vpop.eup %995 }
 0x4d5   :  { %v517_v34 = vsel %vm182_vm2, %v996_v33, 0.0  ;;  %v998_v35 = vpop.eup %997 }
 0x4d6   :  { %518 = vadd.xlane.f32.xlu1 %v517_v34  ;;  %v657_v37 = vsel %vm182_vm2, %v998_v35, 0.0 }
 0x4d8   :  { %v1000_v36 = vpop.eup %999 }
 0x4d9   :  { %v520_v38 = vsel %vm182_vm2, %v1000_v36, 0.0 }
 0x4da   :  { %658 = vadd.xlane.f32.xlu1 %v657_v37  ;;  %521 = vadd.xlane.f32.xlu0 %v520_v38 }
 0x4dc   :  { %v1002_v39 = vpop.eup %1001 }
 0x4dd   :  { %v660_v40 = vsel %vm182_vm2, %v1002_v39, 0.0 }
 0x4de   :  { %661 = vadd.xlane.f32.xlu0 %v660_v40 }
 0x55d   :  { %v379_v42 = vpop.xlane.xlu1 %378 }
 0x55e   :  { %1003 = vrcp.f32 %v379_v42 }
 0x55f   :  { %v382_v43 = vpop.xlane.xlu0 %381 }
 0x560   :  { %1005 = vrcp.f32 %v382_v43 }
 0x563   :  { %v519_v44 = vpop.xlane.xlu1 %518 }
 0x564   :  { %1007 = vrcp.f32 %v519_v44 }
 0x567   :  { %v522_v45 = vpop.xlane.xlu0 %521  ;;  %v659_v51 = vpop.xlane.xlu1 %658 }
 0x568   :  { %v1004_v46 = vpop.eup %1003  ;;  %1009 = vrcp.f32 %v522_v45 }
 0x569   :  { %v385_v48 = vmul.f32 %v1004_v46, %v992_v27 }
 0x56a   :  { %v1006_v47 = vpop.eup %1005 }
 0x56b   :  { %v386_v49 = vmul.f32 %v1006_v47, %v994_v30  ;;  %v662_v50 = vpop.xlane.xlu0 %661 }
 0x56c   :  { %1011 = vrcp.f32 %v662_v50 }
 0x56d   :  { %v387_v53 = vpack.c.bf16 %v386_v49, %v385_v48  ;;  %1013 = vrcp.f32 %v659_v51 }
 0x56e   :  { %v1008_v54 = vpop.eup %1007 }
 0x56f   :  { %911 = vmatmul.mubr.msk.bf16.vlgmr.msra.gmra.mrb[12].mxu1 %vm182_vm2, %v387_v53  ;;  %v525_v56 = vmul.f32 %v1008_v54, %v996_v33 }
 0x570   :  { %921 = vmatpush3.bf16.msra.mxu1 %v977_v52  ;;  %922 = vmatprep.mubr.msk.bf16.mxu1 %vm1163_vm0, %v1162_v0 }
 0x571   :  { %932 = vmatprep.subr.bf16.mxu1 %v1162_v0 }
 0x572   :  { %v1010_v55 = vpop.eup %1009 }
 0x573   :  { %v526_v57 = vmul.f32 %v1010_v55, %v1000_v36 }
 0x575   :  { %v527_v59 = vpack.c.bf16 %v526_v57, %v525_v56 }
 0x576   :  { %v1012_v60 = vpop.eup %1011 }
 0x577   :  { %923 = vmatmul.mubr.msk.bf16.vlgmr.msra.gmra.mrb[16].mxu1 %vm182_vm2, %v527_v59  ;;  %v1014_v61 = vpop.eup %1013  ;;  %v666_v62 = vmul.f32 %v1012_v60, %v1002_v39 }
 0x578   :  { %933 = vmatpush3.bf16.msra.mxu1 %v978_v58  ;;  %934 = vmatprep.mubr.msk.bf16.mxu1 %vm1163_vm0, %v1162_v0  ;;  %v665_v63 = vmul.f32 %v1014_v61, %v998_v35 }
 0x57a   :  { %v667_v1 = vpack.c.bf16 %v666_v62, %v665_v63 }
 0x57f   :  { %935 = vmatmul.mubr.msk.bf16.vlgmr.msra.gmra.mrb[20].mxu1 %vm182_vm2, %v667_v1 }
 0x642   :  { %v431_v2 = vpop.f32.mrb[12].mxu1 }
 0x643   :  { %v912_v4 = vpop.f32.mrb[13].mxu1 }
 0x644   :  { %v434_v5 = vpop.f32.mrb[14].mxu1 }
 0x645   :  { %v438_v7 = vpack.c.bf16 %v434_v5, %v431_v2  ;;  %v913_v8 = vpop.f32.mrb[15].mxu1 }
 0x647   :  { %440 = vrot.lane.b32.xlu1 %v438_v7, %s1167_s27 }
 0x64a   :  { %v571_v10 = vpop.f32.mrb[16].mxu1 }
 0x64b   :  { %v924_v11 = vpop.f32.mrb[17].mxu1 }
 0x64c   :  { %v574_v13 = vpop.f32.mrb[18].mxu1 }
 0x64d   :  { %v578_v14 = vpack.c.bf16 %v574_v13, %v571_v10  ;;  %v925_v15 = vpop.f32.mrb[19].mxu1 }
 0x64f   :  { %580 = vrot.lane.b32.xlu0 %v578_v14, %s1168_s17 }
 0x652   :  { %v711_v16 = vpop.f32.mrb[20].mxu1 }
 0x653   :  { %v936_v17 = vpop.f32.mrb[21].mxu1 }
 0x654   :  { %v714_v18 = vpop.f32.mrb[22].mxu1 }
 0x655   :  { %v718_v19 = vpack.c.bf16 %v714_v18, %v711_v16  ;;  %v937_v20 = vpop.f32.mrb[23].mxu1 }
 0x657   :  { %720 = vrot.lane.b32.xlu1 %v718_v19, %s1169_s18 }
 0x6b9   :  { %v441_v21 = vpop.permute.xlu1 %440 }
 0x6ba   :  { %444 = vst.msk [vmem:[#allocation2] sm:$0xff] %vm443_vm3, %v441_v21 }
 0x6c1   :  { %v581_v22 = vpop.permute.xlu0 %580 }
 0x6c2   :  { %584 = vst.msk [vmem:[#allocation2] sm:$0xff] %vm583_vm4, %v581_v22 }
 0x6c9   :  { %v721_v0 = vpop.permute.xlu1 %720 }
 0x6ca   :  { %724 = vst.msk [vmem:[#allocation2] sm:$0xff] %vm723_vm5, %v721_v0 }
 0x6d1   :  { %v725_v23 = vld [vmem:[#allocation2] sm:$0xff] }
 0x6d2   :  { %947 = vmatmul.mubr.msk.bf16.vlgmr.msra.gmra.mrb[12].mxu0 %vm765_vm6, %v725_v23 }
 0x7a5   :  { %v803_v25 = vpop.f32.mrb[12].mxu0 }
 0x7a6   :  { %v804_v26 = vadd.f32 %v852_v24, %v803_v25  ;;  %v948_v27 = vpop.f32.mrb[13].mxu0 }
 0x7a7   :  { %v806_v28 = vpop.f32.mrb[14].mxu0 }
 0x7a8   :  { %810 = vst [vmem:[#allocation12] sm:$0xff] %v804_v26  ;;  %v807_v29 = vadd.f32 %v852_v24, %v806_v28  ;;  %v949_v30 = vpop.f32.mrb[15].mxu0 }
 0x7aa   :  { %811 = vst [vmem:[#allocation12 + $0x8] sm:$0xff] %v807_v29 }
 0x7ab   :  { %1136 = shalt.err (!%p1133_p2)
}
 0x7ac   :  { %s1137_s1 = scalar_lea.hbm %s1386_s7, 256 }
 0x7ad   :  { %p1138_p3 = scmp.ne.s32.totalorder %s1386_s7, %s1137_s1  ;;  %p1141_p4 = scmp.lt.u32.totalorder %s1137_s1, %s1386_s7 }
 0x7af   :  { %p1143_p5 = pnand %p1141_p4, %p1138_p3 }
 0x7b1   :  { %1146 = shalt.err (!%p1143_p5)
}
 0x7b2   :  { %s1171_s29 = smov 128   ;;  %s1172_s8 = smov 8  }
 0x7b3   :  { %823 = dma.vmem_to_hbm [thread:$0]  %s818_s22, 256, %s1386_s7, [#allocation5], %s1171_s29, %s1171_s29, %s1172_s8  }
 0x7b4   :  { %1153 = dma.done.wait [#allocation5], 256  }
 0x7b5   :  { %1154 = vsyncadd [#allocation5], 4294967040 }
 0x7b6   :  { %827 = vsyncpa [#allocation4], 1 }
 0x7b7   :  { %828 = vsyncpa [#allocation7], 1 }
 0x7b8   :  { %829 = vsyncpa [#allocation10], 1 }
 0x7b9   :  { %830 = vsyncpa [#allocation5], 1 }

</bundles_post_ra>
